<compile_context>
chip_gen: v7x
topology: tpu7x:2x2x1
jax: 0.10.0
libtpu: 0.0.40
codegen_flags: <defaults>
</compile_context>

<pallas_src>
import math

import jax
import jax.numpy as jnp
from jax.experimental import pallas as pl
from jax.experimental.pallas import tpu as pltpu


def _ru(x, m):
    """Round x up to a multiple of m."""
    return ((x + m - 1) // m) * m


# ----------------------------------------------------------------------------
# Fused additive-attention-score kernel (one T-tile per grid step)
# ----------------------------------------------------------------------------
def _additive_attention_kernel(states_ref, ctx_ref, wws_ref, wwc_ref, bw_ref,
                               vrow_ref, bv_ref, out_ref):
    x = states_ref[...]                                   # (Bp, TT, Hp)
    Bp, TT, Hp = x.shape

    # Context half of w(cat(states, context)) + bias  (MXU, tiny: <1% of the
    # states matmul per tile, so recomputing keeps the T axis fully parallel).
    ctx_proj = jnp.dot(ctx_ref[...], wwc_ref[...],
                       preferred_element_type=jnp.float32) + bw_ref[...]   # (Bp, Hp)

    # States half on the MXU: (Bp*TT, Hp) @ (Hp, Hp), f32 accumulate.
    s_proj = jnp.dot(x.reshape(Bp * TT, Hp), wws_ref[...],
                     preferred_element_type=jnp.float32).reshape(Bp, TT, Hp)

    h = jnp.tanh(s_proj + ctx_proj[:, None, :])           # (Bp, TT, Hp)

    # v projection (rank-1): multiply by v row + reduce over lanes, producing a
    # lane-dense (Bp, TT) score tile; bias broadcast from (1, 1).
    scores = jnp.sum(h * vrow_ref[...][None, :, :], axis=2) + bv_ref[...]
    out_ref[...] = scores


# ----------------------------------------------------------------------------
# Wrapper: split/pad weights, tile T, slice back to (B, T, 1)
# ----------------------------------------------------------------------------
@jax.jit
def additive_attention_score(states, context, ww, wb, vw, vb):
    """states (B,T,H), context (B,H); ww (2H,H), wb (H,), vw (H,1), vb (1,)."""
    B, T, H = states.shape
    SUB, LANE = 8, 128
    Bp, Tp, Hp = _ru(B, SUB), _ru(T, LANE), _ru(H, LANE)
    TT = LANE
    f32 = jnp.float32

    # Split the combined-projection weight: first H rows act on states, last H
    # rows act on the broadcast context (ww is stored (in=2H, out=H)).
    ww_s, ww_c = ww[:H, :], ww[H:, :]

    # Zero-pad everything to (8, 128)-aligned tiles (exact: see header).
    states_p = jnp.zeros((Bp, Tp, Hp), f32).at[:B, :T, :H].set(states.astype(f32))
    ctx_p = jnp.zeros((Bp, Hp), f32).at[:B, :H].set(context.astype(f32))
    wws_p = jnp.zeros((Hp, Hp), f32).at[:H, :H].set(ww_s.astype(f32))
    wwc_p = jnp.zeros((Hp, Hp), f32).at[:H, :H].set(ww_c.astype(f32))
    wb_p = jnp.zeros((1, Hp), f32).at[0, :H].set(wb.astype(f32))
    vrow_p = jnp.zeros((1, Hp), f32).at[0, :H].set(vw[:, 0].astype(f32))
    bv_p = jnp.reshape(vb, (1, 1)).astype(f32)

    grid = (Tp // TT,)
    out = pl.pallas_call(
        _additive_attention_kernel,
        out_shape=jax.ShapeDtypeStruct((Bp, Tp), f32),
        grid=grid,
        in_specs=[
            pl.BlockSpec((Bp, TT, Hp), lambda t: (0, t, 0)),   # states: tile over T
            pl.BlockSpec((Bp, Hp), lambda t: (0, 0)),          # context (resident)
            pl.BlockSpec((Hp, Hp), lambda t: (0, 0)),          # Ww_states (resident)
            pl.BlockSpec((Hp, Hp), lambda t: (0, 0)),          # Ww_context (resident)
            pl.BlockSpec((1, Hp), lambda t: (0, 0)),           # b_w
            pl.BlockSpec((1, Hp), lambda t: (0, 0)),           # v row
            pl.BlockSpec((1, 1), lambda t: (0, 0)),            # b_v
        ],
        out_specs=pl.BlockSpec((Bp, TT), lambda t: (0, t)),    # lane-dense scores
        compiler_params=pltpu.CompilerParams(
            dimension_semantics=("parallel",)),
    )(states_p, ctx_p, wws_p, wwc_p, wb_p, vrow_p, bv_p)

    return out[:B, :T].reshape(B, T, 1)


# ----------------------------------------------------------------------------
# Pure-JAX reference (mirrors the PyTorch module exactly)
# ----------------------------------------------------------------------------
def reference(states, context, ww, wb, vw, vb):
    B, T, H = states.shape
    ctx = jnp.broadcast_to(context[:, None, :], (B, T, H))
    comb = jnp.concatenate([states, ctx], axis=2)          # (B, T, 2H)
    hidden = jnp.tanh(comb @ ww + wb)                      # (B, T, H)
    return hidden @ vw + vb                                # (B, T, 1)


if __name__ == "__main__":
    B, T, H = 2, 8, 32
    key = jax.random.PRNGKey(0)
    k_s, k_c, k_w, k_wb, k_v, k_vb = jax.random.split(key, 6)

    states = jax.random.normal(k_s, (B, T, H), jnp.float32)
    context = jax.random.normal(k_c, (B, H), jnp.float32)

    # PyTorch-default Linear init (uniform +/- 1/sqrt(fan_in)), JAX (in, out) layout.
    kw = 1.0 / math.sqrt(2 * H)
    ww = jax.random.uniform(k_w, (2 * H, H), jnp.float32, -kw, kw)
    wb = jax.random.uniform(k_wb, (H,), jnp.float32, -kw, kw)
    kv = 1.0 / math.sqrt(H)
    vw = jax.random.uniform(k_v, (H, 1), jnp.float32, -kv, kv)
    vb = jax.random.uniform(k_vb, (1,), jnp.float32, -kv, kv)

    out = additive_attention_score(states, context, ww, wb, vw, vb)
    out = jax.block_until_ready(out)

    ref = reference(states, context, ww, wb, vw, vb)
    assert out.shape == (B, T, 1), out.shape
    max_err = float(jnp.max(jnp.abs(out - ref)))
    assert jnp.allclose(out, ref, rtol=1e-3, atol=1e-3), max_err
    print("KERNEL_OK")
</pallas_src>

<mosaic_0001>
module attributes {stable_mosaic.version = 11 : i64} {
  func.func @_additive_attention_kernel(%arg0: i32, %arg1: memref<8x128x128xf32, #tpu.memory_space<vmem>>, %arg2: memref<8x128xf32, #tpu.memory_space<vmem>>, %arg3: memref<128x128xf32, #tpu.memory_space<vmem>>, %arg4: memref<128x128xf32, #tpu.memory_space<vmem>>, %arg5: memref<1x128xf32, #tpu.memory_space<vmem>>, %arg6: memref<1x128xf32, #tpu.memory_space<vmem>>, %arg7: memref<1x1xf32, #tpu.memory_space<vmem>>, %arg8: memref<8x128xf32, #tpu.memory_space<vmem>>) attributes {dimension_semantics = [#tpu.dimension_semantics<parallel>], iteration_bounds = array<i64: 1>, scalar_prefetch = 0 : i64, scratch_operands = 0 : i64, tpu.core_type = #tpu.core_type<tc>, window_params = [{transform_indices = @transform_0, window_bounds = array<i64: 8, 128, 128>}, {pipeline_mode = #tpu.pipeline_mode<synchronous>, transform_indices = @transform_1, window_bounds = array<i64: 8, 128>}, {pipeline_mode = #tpu.pipeline_mode<synchronous>, transform_indices = @transform_2, window_bounds = array<i64: 128, 128>}, {pipeline_mode = #tpu.pipeline_mode<synchronous>, transform_indices = @transform_3, window_bounds = array<i64: 128, 128>}, {pipeline_mode = #tpu.pipeline_mode<synchronous>, transform_indices = @transform_4, window_bounds = array<i64: 1, 128>}, {pipeline_mode = #tpu.pipeline_mode<synchronous>, transform_indices = @transform_5, window_bounds = array<i64: 1, 128>}, {pipeline_mode = #tpu.pipeline_mode<synchronous>, transform_indices = @transform_6, window_bounds = array<i64: 1, 1>}, {transform_indices = @transform_7, window_bounds = array<i64: 8, 128>}]} {
    %c0 = arith.constant 0 : index
    %c0_0 = arith.constant 0 : index
    %c0_1 = arith.constant 0 : index
    %0 = vector.load %arg1[%c0, %c0_0, %c0_1] : memref<8x128x128xf32, #tpu.memory_space<vmem>>, vector<8x128x128xf32>
    %c0_2 = arith.constant 0 : index
    %c0_3 = arith.constant 0 : index
    %1 = vector.load %arg2[%c0_2, %c0_3] : memref<8x128xf32, #tpu.memory_space<vmem>>, vector<8x128xf32>
    %c0_4 = arith.constant 0 : index
    %c0_5 = arith.constant 0 : index
    %2 = vector.load %arg4[%c0_4, %c0_5] : memref<128x128xf32, #tpu.memory_space<vmem>>, vector<128x128xf32>
    %cst = arith.constant dense<0.000000e+00> : vector<8x128xf32>
    %3 = tpu.matmul %1, %2, %cst {dimension_numbers = #tpu.dot_dimension_numbers<[1], [0], [0], [1], [0, 0, 1, 1], [], []>} : vector<8x128xf32>, vector<128x128xf32>, vector<8x128xf32> -> vector<8x128xf32>
    %c0_6 = arith.constant 0 : index
    %c0_7 = arith.constant 0 : index
    %4 = vector.load %arg5[%c0_6, %c0_7] : memref<1x128xf32, #tpu.memory_space<vmem>>, vector<1x128xf32>
    %5 = vector.broadcast %4 : vector<1x128xf32> to vector<8x128xf32>
    %6 = arith.addf %3, %5 : vector<8x128xf32>
    %7 = vector.shape_cast %0 : vector<8x128x128xf32> to vector<1024x128xf32>
    %c0_8 = arith.constant 0 : index
    %c0_9 = arith.constant 0 : index
    %8 = vector.load %arg3[%c0_8, %c0_9] : memref<128x128xf32, #tpu.memory_space<vmem>>, vector<128x128xf32>
    %cst_10 = arith.constant dense<0.000000e+00> : vector<1024x128xf32>
    %9 = tpu.matmul %7, %8, %cst_10 {dimension_numbers = #tpu.dot_dimension_numbers<[1], [0], [0], [1], [0, 0, 1, 1], [], []>} : vector<1024x128xf32>, vector<128x128xf32>, vector<1024x128xf32> -> vector<1024x128xf32>
    %10 = vector.shape_cast %9 : vector<1024x128xf32> to vector<8x128x128xf32>
    %11 = vector.shape_cast %6 : vector<8x128xf32> to vector<8x1x128xf32>
    %12 = vector.broadcast %11 : vector<8x1x128xf32> to vector<8x128x128xf32>
    %13 = arith.addf %10, %12 : vector<8x128x128xf32>
    %14 = math.tanh %13 : vector<8x128x128xf32>
    %c0_11 = arith.constant 0 : index
    %c0_12 = arith.constant 0 : index
    %15 = vector.load %arg6[%c0_11, %c0_12] : memref<1x128xf32, #tpu.memory_space<vmem>>, vector<1x128xf32>
    %16 = vector.shape_cast %15 : vector<1x128xf32> to vector<1x1x128xf32>
    %17 = vector.broadcast %16 : vector<1x1x128xf32> to vector<8x128x128xf32>
    %18 = arith.mulf %14, %17 : vector<8x128x128xf32>
    %cst_13 = arith.constant dense<0.000000e+00> : vector<8x128xf32>
    %19 = vector.multi_reduction <add>, %18, %cst_13 [2] : vector<8x128x128xf32> to vector<8x128xf32>
    %c0_14 = arith.constant 0 : index
    %c0_15 = arith.constant 0 : index
    %20 = vector.load %arg7[%c0_14, %c0_15] : memref<1x1xf32, #tpu.memory_space<vmem>>, vector<1x1xf32>
    %21 = vector.broadcast %20 : vector<1x1xf32> to vector<8x128xf32>
    %22 = arith.addf %19, %21 : vector<8x128xf32>
    %c0_16 = arith.constant 0 : index
    %c0_17 = arith.constant 0 : index
    %23 = vector.load %arg8[%c0_16, %c0_17] : memref<8x128xf32, #tpu.memory_space<vmem>>, vector<8x128xf32>
    tpu.vector_store %arg8[%c0_16, %c0_17], %22 {strides = array<i32>} : memref<8x128xf32, #tpu.memory_space<vmem>>, vector<8x128xf32>,
    return
  }
  func.func @transform_0(%arg0: i32) -> (i32, i32, i32) {
    %c0_i32 = arith.constant 0 : i32
    %c0_i32_0 = arith.constant 0 : i32
    %c0_i32_1 = arith.constant 0 : i32
    return %c0_i32, %arg0, %c0_i32_0 : i32, i32, i32
  }
  func.func @transform_1(%arg0: i32) -> (i32, i32) {
    %c0_i32 = arith.constant 0 : i32
    %c0_i32_0 = arith.constant 0 : i32
    %c0_i32_1 = arith.constant 0 : i32
    return %c0_i32, %c0_i32_0 : i32, i32
  }
  func.func @transform_2(%arg0: i32) -> (i32, i32) {
    %c0_i32 = arith.constant 0 : i32
    %c0_i32_0 = arith.constant 0 : i32
    %c0_i32_1 = arith.constant 0 : i32
    return %c0_i32, %c0_i32_0 : i32, i32
  }
  func.func @transform_3(%arg0: i32) -> (i32, i32) {
    %c0_i32 = arith.constant 0 : i32
    %c0_i32_0 = arith.constant 0 : i32
    %c0_i32_1 = arith.constant 0 : i32
    return %c0_i32, %c0_i32_0 : i32, i32
  }
  func.func @transform_4(%arg0: i32) -> (i32, i32) {
    %c0_i32 = arith.constant 0 : i32
    %c0_i32_0 = arith.constant 0 : i32
    %c0_i32_1 = arith.constant 0 : i32
    return %c0_i32, %c0_i32_0 : i32, i32
  }
  func.func @transform_5(%arg0: i32) -> (i32, i32) {
    %c0_i32 = arith.constant 0 : i32
    %c0_i32_0 = arith.constant 0 : i32
    %c0_i32_1 = arith.constant 0 : i32
    return %c0_i32, %c0_i32_0 : i32, i32
  }
  func.func @transform_6(%arg0: i32) -> (i32, i32) {
    %c0_i32 = arith.constant 0 : i32
    %c0_i32_0 = arith.constant 0 : i32
    %c0_i32_1 = arith.constant 0 : i32
    return %c0_i32, %c0_i32_0 : i32, i32
  }
  func.func @transform_7(%arg0: i32) -> (i32, i32) {
    %c0_i32 = arith.constant 0 : i32
    %c0_i32_0 = arith.constant 0 : i32
    return %c0_i32, %arg0 : i32, i32
  }
}

</mosaic_0001>

<bundles_post_ra>
// kernel: additive_attention_score.1
= control target key start
LH: loop header
LB: loop body
LE: loop exit
PB: predicated region body
PF: predicated region fallthrough
CT: control target
= control target key end

     0   :  { %v3417_v0 = vmov 0.0|0.0   ;;  %vm3418_vm0 = vmmov 0   ;;  %v3419_v4 = vmov 0.0   ;;  %v3420_v62 = vmov 0   ;;  %s5129_s3 = inlined_call_operand.vmem [shape: f32[128,128], index: 3, kind: input, shape index: {}]   ;;  %s5130_s2 = inlined_call_operand.vmem [shape: f32[128,128], index: 2, kind: input, shape index: {}]   ;;  %s5131_s0 = inlined_call_operand.vmem [shape: f32[8,128,128], index: 0, kind: input, shape index: {}]   ;;  %s5132_s1 = inlined_call_operand.vmem [shape: f32[8,128], index: 1, kind: input, shape index: {}]   ;;  %s5133_s6 = inlined_call_operand.<no memory space> [shape: f32[1,1], index: 6, kind: input, shape index: {}]   ;;  %s5134_s4 = inlined_call_operand.vmem [shape: f32[1,128], index: 4, kind: input, shape index: {}]   ;;  %s5135_s5 = inlined_call_operand.vmem [shape: f32[1,128], index: 5, kind: input, shape index: {}]   ;;  %s5136_s7 = inlined_call_operand.vmem [shape: f32[8,128], index: 7, kind: output, shape index: {}]  }
   0x1   :  { %3081 = vmatprep.subr.bf16.mxu0 %v3417_v0  ;;  %v157_v1 = vld [vmem:[%s5129_s3] sm:$0xff]  ;;  %v158_v2 = vld [vmem:[%s5129_s3 + $0x8] sm:$0xff]  ;;  %2854 = vmatprep.mubr.msk.f32.mxu0 %vm3418_vm0, %v3419_v4  ;;  %v159_v7 = vld [vmem:[%s5129_s3 + $0x10] sm:$0xff]  ;;  %v12_v63 = vstv %s5133_s6  ;;  %vm1985_vm1 = vcmask 130112   ;;  %vm1992_vm2 = vcmask 195712   ;;  %vm1999_vm3 = vcmask 261312  }
   0x2   :  { %v250_v3 = vld [vmem:[%s5130_s2] sm:$0xff]  ;;  %v3082_v5 = vpack.c.bf16 %v158_v2, %v157_v1  ;;  %v251_v6 = vld [vmem:[%s5130_s2 + $0x8] sm:$0xff]  ;;  %v160_v8 = vld [vmem:[%s5129_s3 + $0x18] sm:$0xff]  ;;  %3158 = vset.pattern.permute.xlu0 %v3420_v62  ;;  %13 = vst [vmem:[#allocation2] sm:$0x1] %v12_v63  ;;  %vm2006_vm4 = vcmask 326912  }
   0x3   :  { %v3481_v9 = vpack.c.bf16 %v251_v6, %v250_v3  ;;  %v252_v10 = vld [vmem:[%s5130_s2 + $0x10] sm:$0xff]  ;;  %v253_v11 = vld [vmem:[%s5130_s2 + $0x18] sm:$0xff]  ;;  %v3085_v12 = vpack.c.bf16 %v160_v8, %v159_v7  ;;  %v254_v14 = vld [vmem:[%s5130_s2 + $0x20] sm:$0xff]  ;;  %vm2013_vm5 = vcmask 392512   ;;  %vm2020_vm6 = vcmask 458112  }
   0x4   :  { %3083 = vmatpush3.bf16.msra.mxu0 %v3082_v5  ;;  %v3489_v13 = vpack.c.bf16 %v253_v11, %v252_v10  ;;  %v255_v15 = vld [vmem:[%s5130_s2 + $0x28] sm:$0xff]  ;;  %v161_v16 = vld [vmem:[%s5129_s3 + $0x20] sm:$0xff]  ;;  %v256_v20 = vld [vmem:[%s5130_s2 + $0x30] sm:$0xff]  ;;  %vm2027_vm7 = vcmask 523712   ;;  %vm2034_vm8 = vcmask 589312   ;;  %vm2041_vm9 = vcmask 654912  }
   0x5   :  { %3137 = vmatprep.subr.bf16.mxu1 %v3481_v9  ;;  %3084 = vmatprep.subr.bf16.mxu0 %v3417_v0  ;;  %v162_v17 = vld [vmem:[%s5129_s3 + $0x28] sm:$0xff]  ;;  %v3507_v18 = vpack.c.bf16 %v255_v15, %v254_v14  ;;  %v257_v21 = vld [vmem:[%s5130_s2 + $0x38] sm:$0xff]  ;;  %v163_v22 = vld [vmem:[%s5129_s3 + $0x30] sm:$0xff]  ;;  %vm2048_vm10 = vcmask 720512   ;;  %vm2055_vm11 = vcmask 786112   ;;  %vm2062_vm12 = vcmask 851712  }
   0x6   :  { %3145 = vmatpush3.bf16.msra.mxu1 %v3481_v9  ;;  %v3088_v19 = vpack.c.bf16 %v162_v17, %v161_v16  ;;  %v164_v23 = vld [vmem:[%s5129_s3 + $0x38] sm:$0xff]  ;;  %v3524_v24 = vpack.c.bf16 %v257_v21, %v256_v20  ;;  %v258_v26 = vld [vmem:[%s5130_s2 + $0x40] sm:$0xff]  ;;  %v259_v27 = vld [vmem:[%s5130_s2 + $0x48] sm:$0xff]  ;;  %vm2069_vm13 = vcmask 917312   ;;  %vm2076_vm14 = vcmask 982912  }
   0x7   :  { %3138 = vmatprep.subr.bf16.mxu1 %v3489_v13  ;;  %v3091_v25 = vpack.c.bf16 %v164_v23, %v163_v22  ;;  %v84_v28 = vld [vmem:[%s5131_s0 + $0x1c0] sm:$0xff]  ;;  %v166_v30 = vld [vmem:[%s5129_s3 + $0x48] sm:$0xff]  ;;  %v3544_v31 = vpack.c.bf16 %v259_v27, %v258_v26  ;;  %v260_v33 = vld [vmem:[%s5130_s2 + $0x50] sm:$0xff]  ;;  %vm2083_vm15 = vcmask 1048512   ;;  %vm2638_vm0 = vcmask 1041409  }
   0x8   :  { %3086 = vmatpush3.bf16.msra.mxu0 %v3085_v12  ;;  %v165_v29 = vld [vmem:[%s5129_s3 + $0x40] sm:$0xff]  ;;  %2973 = vmatprep.mubr.f32.mxu1 %v84_v28  ;;  %v261_v34 = vld [vmem:[%s5130_s2 + $0x58] sm:$0xff]  ;;  %v167_v35 = vld [vmem:[%s5129_s3 + $0x50] sm:$0xff] }
   0x9   :  { %3087 = vmatprep.subr.bf16.mxu0 %v3417_v0  ;;  %v3094_v32 = vpack.c.bf16 %v166_v30, %v165_v29  ;;  %v168_v36 = vld [vmem:[%s5129_s3 + $0x58] sm:$0xff]  ;;  %v3561_v37 = vpack.c.bf16 %v261_v34, %v260_v33  ;;  %v262_v39 = vld [vmem:[%s5130_s2 + $0x60] sm:$0xff]  ;;  %v263_v40 = vld [vmem:[%s5130_s2 + $0x68] sm:$0xff] }
   0xa   :  { %3146 = vmatpush3.bf16.msra.mxu1 %v3489_v13  ;;  %v3097_v38 = vpack.c.bf16 %v168_v36, %v167_v35  ;;  %v169_v41 = vld [vmem:[%s5129_s3 + $0x60] sm:$0xff]  ;;  %v170_v42 = vld [vmem:[%s5129_s3 + $0x68] sm:$0xff]  ;;  %v3578_v43 = vpack.c.bf16 %v263_v40, %v262_v39  ;;  %v264_v45 = vld [vmem:[%s5130_s2 + $0x70] sm:$0xff] }
   0xb   :  { %3139 = vmatprep.subr.bf16.mxu1 %v3507_v18  ;;  %v3100_v44 = vpack.c.bf16 %v170_v42, %v169_v41  ;;  %v265_v46 = vld [vmem:[%s5130_s2 + $0x78] sm:$0xff]  ;;  %v171_v47 = vld [vmem:[%s5129_s3 + $0x70] sm:$0xff]  ;;  %v156_v51 = vld [vmem:[%s5132_s1] sm:$0xff] }
   0xc   :  { %3089 = vmatpush3.bf16.msra.mxu0 %v3088_v19  ;;  %v172_v48 = vld [vmem:[%s5129_s3 + $0x78] sm:$0xff]  ;;  %v3595_v49 = vpack.c.bf16 %v265_v46, %v264_v45  ;;  %v28_v52 = vld [vmem:[%s5131_s0] sm:$0xff]  ;;  %v85_v53 = vld [vmem:[%s5131_s0 + $0x1c8] sm:$0xff] }
   0xd   :  { %3090 = vmatprep.subr.bf16.mxu0 %v3417_v0  ;;  %v3103_v50 = vpack.c.bf16 %v172_v48, %v171_v47  ;;  %v86_v54 = vld [vmem:[%s5131_s0 + $0x1d0] sm:$0xff]  ;;  %v87_v55 = vld [vmem:[%s5131_s0 + $0x1d8] sm:$0xff]  ;;  %v88_v56 = vld [vmem:[%s5131_s0 + $0x1e0] sm:$0xff] }
   0xe   :  { %3147 = vmatpush3.bf16.msra.mxu1 %v3507_v18  ;;  %v89_v57 = vld [vmem:[%s5131_s0 + $0x1e8] sm:$0xff]  ;;  %v90_v58 = vld [vmem:[%s5131_s0 + $0x1f0] sm:$0xff]  ;;  %v91_v59 = vld [vmem:[%s5131_s0 + $0x1f8] sm:$0xff] }
   0xf   :  { %3140 = vmatprep.subr.bf16.mxu1 %v3524_v24  ;;  %v92_v60 = vld [vmem:[%s5131_s0 + $0x200] sm:$0xff]  ;;  %v93_v61 = vld [vmem:[%s5131_s0 + $0x208] sm:$0xff]  ;;  %v95_v1 = vld [vmem:[%s5131_s0 + $0x218] sm:$0xff] }
  0x10   :  { %3092 = vmatpush3.bf16.msra.mxu0 %v3091_v25  ;;  %v96_v2 = vld [vmem:[%s5131_s0 + $0x220] sm:$0xff]  ;;  %v97_v3 = vld [vmem:[%s5131_s0 + $0x228] sm:$0xff]  ;;  %v98_v5 = vld [vmem:[%s5131_s0 + $0x230] sm:$0xff] }
  0x11   :  { %3093 = vmatprep.subr.bf16.mxu0 %v3417_v0  ;;  %v2660_v4 = vld [vmem:[#allocation2] ss:$0 sm:$0xff]  ;;  %v99_v6 = vld [vmem:[%s5131_s0 + $0x238] sm:$0xff]  ;;  %v29_v8 = vld [vmem:[%s5131_s0 + $0x8] sm:$0xff] }
  0x12   :  { %3148 = vmatpush3.bf16.msra.mxu1 %v3524_v24  ;;  %1715 = vperm.xlu0 %3158, %v2660_v4   ;;  %v100_v7 = vld [vmem:[%s5131_s0 + $0x240] sm:$0xff]  ;;  %v101_v10 = vld [vmem:[%s5131_s0 + $0x248] sm:$0xff]  ;;  %v102_v11 = vld [vmem:[%s5131_s0 + $0x250] sm:$0xff] }
  0x13   :  { %3141 = vmatprep.subr.bf16.mxu1 %v3544_v31  ;;  %v31_v12 = vld [vmem:[%s5131_s0 + $0x18] sm:$0xff]  ;;  %v104_v15 = vld [vmem:[%s5131_s0 + $0x260] sm:$0xff]  ;;  %v33_v16 = vld [vmem:[%s5131_s0 + $0x28] sm:$0xff] }
  0x14   :  { %3095 = vmatpush3.bf16.msra.mxu0 %v3094_v32  ;;  %v103_v14 = vld [vmem:[%s5131_s0 + $0x258] sm:$0xff]  ;;  %v34_v17 = vld [vmem:[%s5131_s0 + $0x30] sm:$0xff]  ;;  %v36_v21 = vld [vmem:[%s5131_s0 + $0x40] sm:$0xff] }
  0x15   :  { %3096 = vmatprep.subr.bf16.mxu0 %v3417_v0  ;;  %v106_v19 = vld [vmem:[%s5131_s0 + $0x270] sm:$0xff]  ;;  %v35_v20 = vld [vmem:[%s5131_s0 + $0x38] sm:$0xff]  ;;  %v108_v23 = vld [vmem:[%s5131_s0 + $0x280] sm:$0xff] }
  0x16   :  { %3149 = vmatpush3.bf16.msra.mxu1 %v3544_v31  ;;  %v107_v22 = vld [vmem:[%s5131_s0 + $0x278] sm:$0xff]  ;;  %v38_v25 = vld [vmem:[%s5131_s0 + $0x50] sm:$0xff]  ;;  %v109_v26 = vld [vmem:[%s5131_s0 + $0x288] sm:$0xff] }
  0x17   :  { %3142 = vmatprep.subr.bf16.mxu1 %v3561_v37  ;;  %v110_v27 = vld [vmem:[%s5131_s0 + $0x290] sm:$0xff]  ;;  %v39_v28 = vld [vmem:[%s5131_s0 + $0x58] sm:$0xff]  ;;  %v40_v29 = vld [vmem:[%s5131_s0 + $0x60] sm:$0xff] }
  0x18   :  { %3098 = vmatpush3.bf16.msra.mxu0 %v3097_v38  ;;  %v111_v30 = vld [vmem:[%s5131_s0 + $0x298] sm:$0xff]  ;;  %v41_v32 = vld [vmem:[%s5131_s0 + $0x68] sm:$0xff]  ;;  %v42_v33 = vld [vmem:[%s5131_s0 + $0x70] sm:$0xff] }
  0x19   :  { %3099 = vmatprep.subr.bf16.mxu0 %v3417_v0  ;;  %v113_v34 = vld [vmem:[%s5131_s0 + $0x2a8] sm:$0xff]  ;;  %v114_v35 = vld [vmem:[%s5131_s0 + $0x2b0] sm:$0xff]  ;;  %v43_v36 = vld [vmem:[%s5131_s0 + $0x78] sm:$0xff] }
  0x1a   :  { %3150 = vmatpush3.bf16.msra.mxu1 %v3561_v37  ;;  %v115_v38 = vld [vmem:[%s5131_s0 + $0x2b8] sm:$0xff]  ;;  %v116_v39 = vld [vmem:[%s5131_s0 + $0x2c0] sm:$0xff]  ;;  %v45_v40 = vld [vmem:[%s5131_s0 + $0x88] sm:$0xff] }
  0x1b   :  { %3143 = vmatprep.subr.bf16.mxu1 %v3578_v43  ;;  %v46_v41 = vld [vmem:[%s5131_s0 + $0x90] sm:$0xff]  ;;  %v117_v42 = vld [vmem:[%s5131_s0 + $0x2c8] sm:$0xff]  ;;  %v48_v45 = vld [vmem:[%s5131_s0 + $0xa0] sm:$0xff] }
  0x1c   :  { %3101 = vmatpush3.bf16.msra.mxu0 %v3100_v44  ;;  %v47_v44 = vld [vmem:[%s5131_s0 + $0x98] sm:$0xff]  ;;  %v120_v47 = vld [vmem:[%s5131_s0 + $0x2e0] sm:$0xff]  ;;  %v49_v48 = vld [vmem:[%s5131_s0 + $0xa8] sm:$0xff] }
  0x1d   :  { %3102 = vmatprep.subr.bf16.mxu0 %v3417_v0  ;;  %v94_v0 = vld [vmem:[%s5131_s0 + $0x210] sm:$0xff]  ;;  %v119_v46 = vld [vmem:[%s5131_s0 + $0x2d8] sm:$0xff]  ;;  %v128_v63 = vld [vmem:[%s5131_s0 + $0x320] sm:$0xff] }
  0x1e   :  { %3151 = vmatpush3.bf16.msra.mxu1 %v3578_v43  ;;  %v127_v62 = vld [vmem:[%s5131_s0 + $0x318] sm:$0xff] }
  0x1f   :  { %3144 = vmatprep.subr.bf16.mxu1 %v3595_v49  ;;  %v59_v4 = vld [vmem:[%s5131_s0 + $0xf8] sm:$0xff] }
  0x20   :  { %3104 = vmatpush3.bf16.msra.mxu0 %v3103_v50  ;;  %v121_v50 = vld [vmem:[%s5131_s0 + $0x2e8] sm:$0xff] }
  0x21   :  { %3106 = vmatprep.subr.bf16.mxu0 %v3481_v9 }
  0x22   :  { %3152 = vmatpush3.bf16.msra.mxu1 %v3595_v49 }
  0x23   :  { %2855 = vmatmul.mubr.f32.vlgmr.msra.gmra.mrb[0].mxu0 %v156_v51  ;;  %v122_v51 = vld [vmem:[%s5131_s0 + $0x2f0] sm:$0xff] }
  0x24   :  { %3108 = vmatpush3.bf16.msra.mxu0 %v3481_v9  ;;  %2889 = vmatprep.mubr.f32.mxu0 %v28_v52  ;;  %v30_v9 = vld [vmem:[%s5131_s0 + $0x10] sm:$0xff]  ;;  %v51_v52 = vld [vmem:[%s5131_s0 + $0xb8] sm:$0xff] }
  0x25   :  { %2974 = vmatmul.mubr.f32.vlgmr.msra.gmra.mrb[0].mxu1 %v85_v53  ;;  %3110 = vmatprep.subr.bf16.mxu0 %v3489_v13  ;;  %v52_v53 = vld [vmem:[%s5131_s0 + $0xc0] sm:$0xff] }
  0x26   :  { %2976 = vmatprep.mubr.f32.mxu1 %v86_v54  ;;  %v123_v54 = vld [vmem:[%s5131_s0 + $0x2f8] sm:$0xff] }
  0x28   :  { %3112 = vmatpush3.bf16.msra.mxu0 %v3489_v13  ;;  %v32_v13 = vld [vmem:[%s5131_s0 + $0x20] sm:$0xff] }
  0x29   :  { %2977 = vmatmul.mubr.f32.gmra.mrb[2].mxu1 %v87_v55  ;;  %3114 = vmatprep.subr.bf16.mxu0 %v3507_v18  ;;  %v124_v55 = vld [vmem:[%s5131_s0 + $0x300] sm:$0xff] }
  0x2a   :  { %2979 = vmatprep.mubr.f32.mxu1 %v88_v56  ;;  %v53_v56 = vld [vmem:[%s5131_s0 + $0xc8] sm:$0xff] }
  0x2c   :  { %3116 = vmatpush3.bf16.msra.mxu0 %v3507_v18  ;;  %v105_v18 = vld [vmem:[%s5131_s0 + $0x268] sm:$0xff] }
  0x2d   :  { %2980 = vmatmul.mubr.f32.gmra.mrb[4].mxu1 %v89_v57  ;;  %3118 = vmatprep.subr.bf16.mxu0 %v3524_v24  ;;  %v54_v57 = vld [vmem:[%s5131_s0 + $0xd0] sm:$0xff] }
  0x2e   :  { %2982 = vmatprep.mubr.f32.mxu1 %v90_v58  ;;  %v125_v58 = vld [vmem:[%s5131_s0 + $0x308] sm:$0xff] }
  0x30   :  { %3120 = vmatpush3.bf16.msra.mxu0 %v3524_v24  ;;  %v37_v24 = vld [vmem:[%s5131_s0 + $0x48] sm:$0xff] }
  0x31   :  { %2983 = vmatmul.mubr.f32.gmra.mrb[6].mxu1 %v91_v59  ;;  %3122 = vmatprep.subr.bf16.mxu0 %v3544_v31  ;;  %v126_v59 = vld [vmem:[%s5131_s0 + $0x310] sm:$0xff] }
  0x32   :  { %2985 = vmatprep.mubr.f32.mxu1 %v92_v60  ;;  %v55_v60 = vld [vmem:[%s5131_s0 + $0xd8] sm:$0xff] }
  0x34   :  { %3124 = vmatpush3.bf16.msra.mxu0 %v3544_v31  ;;  %v112_v31 = vld [vmem:[%s5131_s0 + $0x2a0] sm:$0xff] }
  0x35   :  { %2986 = vmatmul.mubr.f32.gmra.mrb[8].mxu1 %v93_v61  ;;  %3126 = vmatprep.subr.bf16.mxu0 %v3561_v37  ;;  %v56_v61 = vld [vmem:[%s5131_s0 + $0xe0] sm:$0xff] }
  0x36   :  { %2988 = vmatprep.mubr.f32.mxu1 %v94_v0  ;;  %v57_v0 = vld [vmem:[%s5131_s0 + $0xe8] sm:$0xff] }
  0x38   :  { %3128 = vmatpush3.bf16.msra.mxu0 %v3561_v37  ;;  %v44_v37 = vld [vmem:[%s5131_s0 + $0x80] sm:$0xff] }
  0x39   :  { %2989 = vmatmul.mubr.f32.gmra.mrb[10].mxu1 %v95_v1  ;;  %3130 = vmatprep.subr.bf16.mxu0 %v3578_v43  ;;  %v58_v1 = vld [vmem:[%s5131_s0 + $0xf0] sm:$0xff] }
  0x3a   :  { %2991 = vmatprep.mubr.f32.mxu1 %v96_v2  ;;  %v129_v2 = vld [vmem:[%s5131_s0 + $0x328] sm:$0xff] }
  0x3c   :  { %3132 = vmatpush3.bf16.msra.mxu0 %v3578_v43  ;;  %v118_v43 = vld [vmem:[%s5131_s0 + $0x2d0] sm:$0xff] }
  0x3d   :  { %2992 = vmatmul.mubr.f32.gmra.mrb[12].mxu1 %v97_v3  ;;  %3134 = vmatprep.subr.bf16.mxu0 %v3595_v49  ;;  %v130_v3 = vld [vmem:[%s5131_s0 + $0x330] sm:$0xff] }
  0x3e   :  { %2994 = vmatprep.mubr.f32.mxu1 %v98_v5  ;;  %v60_v5 = vld [vmem:[%s5131_s0 + $0x100] sm:$0xff] }
  0x40   :  { %3136 = vmatpush3.bf16.msra.mxu0 %v3595_v49  ;;  %v50_v49 = vld [vmem:[%s5131_s0 + $0xb0] sm:$0xff] }
  0x41   :  { %2995 = vmatmul.mubr.f32.gmra.mrb[14].mxu1 %v99_v6  ;;  %v131_v6 = vld [vmem:[%s5131_s0 + $0x338] sm:$0xff] }
  0x42   :  { %2997 = vmatprep.mubr.f32.mxu1 %v100_v7  ;;  %v132_v7 = vld [vmem:[%s5131_s0 + $0x340] sm:$0xff] }
  0x43   :  { %2890 = vmatmul.mubr.f32.vlgmr.msra.gmra.mrb[2].mxu0 %v29_v8  ;;  %v61_v8 = vld [vmem:[%s5131_s0 + $0x108] sm:$0xff] }
  0x44   :  { %2892 = vmatprep.mubr.f32.mxu0 %v30_v9  ;;  %v62_v9 = vld [vmem:[%s5131_s0 + $0x110] sm:$0xff] }
  0x45   :  { %2998 = vmatmul.mubr.f32.gmra.mrb[16].mxu1 %v101_v10  ;;  %v133_v10 = vld [vmem:[%s5131_s0 + $0x348] sm:$0xff] }
  0x46   :  { %3000 = vmatprep.mubr.f32.mxu1 %v102_v11  ;;  %v134_v11 = vld [vmem:[%s5131_s0 + $0x350] sm:$0xff] }
  0x47   :  { %2893 = vmatmul.mubr.f32.gmra.mrb[4].mxu0 %v31_v12  ;;  %v63_v12 = vld [vmem:[%s5131_s0 + $0x118] sm:$0xff] }
  0x48   :  { %2895 = vmatprep.mubr.f32.mxu0 %v32_v13  ;;  %v64_v13 = vld [vmem:[%s5131_s0 + $0x120] sm:$0xff] }
  0x49   :  { %3001 = vmatmul.mubr.f32.gmra.mrb[18].mxu1 %v103_v14  ;;  %v135_v14 = vld [vmem:[%s5131_s0 + $0x358] sm:$0xff] }
  0x4a   :  { %3003 = vmatprep.mubr.f32.mxu1 %v104_v15  ;;  %v136_v15 = vld [vmem:[%s5131_s0 + $0x360] sm:$0xff] }
  0x4b   :  { %2896 = vmatmul.mubr.f32.gmra.mrb[6].mxu0 %v33_v16  ;;  %v65_v16 = vld [vmem:[%s5131_s0 + $0x128] sm:$0xff] }
  0x4c   :  { %2898 = vmatprep.mubr.f32.mxu0 %v34_v17  ;;  %v66_v17 = vld [vmem:[%s5131_s0 + $0x130] sm:$0xff] }
  0x4d   :  { %3004 = vmatmul.mubr.f32.gmra.mrb[20].mxu1 %v105_v18  ;;  %v137_v18 = vld [vmem:[%s5131_s0 + $0x368] sm:$0xff] }
  0x4e   :  { %3006 = vmatprep.mubr.f32.mxu1 %v106_v19  ;;  %v138_v19 = vld [vmem:[%s5131_s0 + $0x370] sm:$0xff] }
  0x4f   :  { %2899 = vmatmul.mubr.f32.gmra.mrb[8].mxu0 %v35_v20  ;;  %v67_v20 = vld [vmem:[%s5131_s0 + $0x138] sm:$0xff] }
  0x50   :  { %2901 = vmatprep.mubr.f32.mxu0 %v36_v21  ;;  %v68_v21 = vld [vmem:[%s5131_s0 + $0x140] sm:$0xff] }
  0x51   :  { %3007 = vmatmul.mubr.f32.gmra.mrb[22].mxu1 %v107_v22  ;;  %v139_v22 = vld [vmem:[%s5131_s0 + $0x378] sm:$0xff] }
  0x52   :  { %3009 = vmatprep.mubr.f32.mxu1 %v108_v23  ;;  %v140_v23 = vld [vmem:[%s5131_s0 + $0x380] sm:$0xff] }
  0x53   :  { %2902 = vmatmul.mubr.f32.gmra.mrb[10].mxu0 %v37_v24  ;;  %v69_v24 = vld [vmem:[%s5131_s0 + $0x148] sm:$0xff] }
  0x54   :  { %2904 = vmatprep.mubr.f32.mxu0 %v38_v25  ;;  %v70_v25 = vld [vmem:[%s5131_s0 + $0x150] sm:$0xff] }
  0x55   :  { %3010 = vmatmul.mubr.f32.gmra.mrb[24].mxu1 %v109_v26  ;;  %v141_v26 = vld [vmem:[%s5131_s0 + $0x388] sm:$0xff] }
  0x56   :  { %3012 = vmatprep.mubr.f32.mxu1 %v110_v27  ;;  %v142_v27 = vld [vmem:[%s5131_s0 + $0x390] sm:$0xff] }
  0x57   :  { %2905 = vmatmul.mubr.f32.gmra.mrb[12].mxu0 %v39_v28  ;;  %v71_v28 = vld [vmem:[%s5131_s0 + $0x158] sm:$0xff] }
  0x58   :  { %2907 = vmatprep.mubr.f32.mxu0 %v40_v29  ;;  %v72_v29 = vld [vmem:[%s5131_s0 + $0x160] sm:$0xff] }
  0x59   :  { %3013 = vmatmul.mubr.f32.gmra.mrb[26].mxu1 %v111_v30  ;;  %v143_v30 = vld [vmem:[%s5131_s0 + $0x398] sm:$0xff] }
  0x5a   :  { %3015 = vmatprep.mubr.f32.mxu1 %v112_v31  ;;  %v144_v31 = vld [vmem:[%s5131_s0 + $0x3a0] sm:$0xff] }
  0x5b   :  { %2908 = vmatmul.mubr.f32.gmra.mrb[14].mxu0 %v41_v32  ;;  %v73_v32 = vld [vmem:[%s5131_s0 + $0x168] sm:$0xff] }
  0x5c   :  { %2910 = vmatprep.mubr.f32.mxu0 %v42_v33  ;;  %v74_v33 = vld [vmem:[%s5131_s0 + $0x170] sm:$0xff] }
  0x5d   :  { %3016 = vmatmul.mubr.f32.gmra.mrb[28].mxu1 %v113_v34  ;;  %v145_v34 = vld [vmem:[%s5131_s0 + $0x3a8] sm:$0xff] }
  0x5e   :  { %3018 = vmatprep.mubr.f32.mxu1 %v114_v35  ;;  %v146_v35 = vld [vmem:[%s5131_s0 + $0x3b0] sm:$0xff] }
  0x5f   :  { %2911 = vmatmul.mubr.f32.gmra.mrb[16].mxu0 %v43_v36  ;;  %v75_v36 = vld [vmem:[%s5131_s0 + $0x178] sm:$0xff] }
  0x60   :  { %2913 = vmatprep.mubr.f32.mxu0 %v44_v37  ;;  %v76_v37 = vld [vmem:[%s5131_s0 + $0x180] sm:$0xff] }
  0x61   :  { %3019 = vmatmul.mubr.f32.gmra.mrb[30].mxu1 %v115_v38  ;;  %v147_v38 = vld [vmem:[%s5131_s0 + $0x3b8] sm:$0xff] }
  0x62   :  { %3021 = vmatprep.mubr.f32.mxu1 %v116_v39  ;;  %v148_v39 = vld [vmem:[%s5131_s0 + $0x3c0] sm:$0xff] }
  0x63   :  { %2914 = vmatmul.mubr.f32.gmra.mrb[18].mxu0 %v45_v40  ;;  %v77_v40 = vld [vmem:[%s5131_s0 + $0x188] sm:$0xff] }
  0x64   :  { %2916 = vmatprep.mubr.f32.mxu0 %v46_v41  ;;  %v78_v41 = vld [vmem:[%s5131_s0 + $0x190] sm:$0xff] }
  0x65   :  { %3022 = vmatmul.mubr.f32.gmra.mrb[32].mxu1 %v117_v42  ;;  %v149_v42 = vld [vmem:[%s5131_s0 + $0x3c8] sm:$0xff] }
  0x66   :  { %3024 = vmatprep.mubr.f32.mxu1 %v118_v43  ;;  %v150_v43 = vld [vmem:[%s5131_s0 + $0x3d0] sm:$0xff] }
  0x67   :  { %2917 = vmatmul.mubr.f32.gmra.mrb[20].mxu0 %v47_v44  ;;  %v79_v44 = vld [vmem:[%s5131_s0 + $0x198] sm:$0xff] }
  0x68   :  { %2919 = vmatprep.mubr.f32.mxu0 %v48_v45  ;;  %v80_v45 = vld [vmem:[%s5131_s0 + $0x1a0] sm:$0xff] }
  0x69   :  { %3025 = vmatmul.mubr.f32.gmra.mrb[34].mxu1 %v119_v46  ;;  %v151_v46 = vld [vmem:[%s5131_s0 + $0x3d8] sm:$0xff] }
  0x6a   :  { %3027 = vmatprep.mubr.f32.mxu1 %v120_v47  ;;  %v152_v47 = vld [vmem:[%s5131_s0 + $0x3e0] sm:$0xff] }
  0x6b   :  { %2920 = vmatmul.mubr.f32.gmra.mrb[22].mxu0 %v49_v48  ;;  %v81_v48 = vld [vmem:[%s5131_s0 + $0x1a8] sm:$0xff] }
  0x6c   :  { %2922 = vmatprep.mubr.f32.mxu0 %v50_v49  ;;  %v82_v49 = vld [vmem:[%s5131_s0 + $0x1b0] sm:$0xff] }
  0x6d   :  { %3028 = vmatmul.mubr.f32.gmra.mrb[36].mxu1 %v121_v50  ;;  %v153_v50 = vld [vmem:[%s5131_s0 + $0x3e8] sm:$0xff] }
  0x6e   :  { %3030 = vmatprep.mubr.f32.mxu1 %v122_v51  ;;  %v154_v51 = vld [vmem:[%s5131_s0 + $0x3f0] sm:$0xff] }
  0x6f   :  { %2923 = vmatmul.mubr.f32.gmra.mrb[24].mxu0 %v51_v52  ;;  %v83_v52 = vld [vmem:[%s5131_s0 + $0x1b8] sm:$0xff] }
  0x70   :  { %2925 = vmatprep.mubr.f32.mxu0 %v52_v53  ;;  %v155_v53 = vld [vmem:[%s5131_s0 + $0x3f8] sm:$0xff] }
  0x71   :  { %3031 = vmatmul.mubr.f32.gmra.mrb[38].mxu1 %v123_v54  ;;  %v3421_v54 = vmov 1966171168  }
  0x72   :  { %3033 = vmatprep.mubr.f32.mxu1 %v124_v55  ;;  %v974_v55 = vunpack.c.l.s4 %v3421_v54 }
  0x73   :  { %2926 = vmatmul.mubr.f32.gmra.mrb[26].mxu0 %v53_v56  ;;  %v5137_v56 = vlaneseq }
  0x74   :  { %2928 = vmatprep.mubr.f32.mxu0 %v54_v57  ;;  %v975_v57 = vunpack.c.0.s8 %v974_v55 }
  0x75   :  { %3034 = vmatmul.mubr.f32.gmra.mrb[40].mxu1 %v125_v58  ;;  %v4005_v58 = vshrl.u32 %v5137_v56, 7 }
  0x76   :  { %3036 = vmatprep.mubr.f32.mxu1 %v126_v59  ;;  %v2658_v59 = vld [vmem:[%s5134_s4] ss:$0 sm:$0xff] }
  0x77   :  { %2929 = vmatmul.mubr.f32.gmra.mrb[28].mxu0 %v55_v60  ;;  %v978_v60 = vsub.s32 %v975_v57, %v4005_v58 }
  0x78   :  { %2931 = vmatprep.mubr.f32.mxu0 %v56_v61 }
  0x79   :  { %3037 = vmatmul.mubr.f32.gmra.mrb[42].mxu1 %v127_v62 }
  0x7a   :  { %3039 = vmatprep.mubr.f32.mxu1 %v128_v63 }
  0x7b   :  { %2932 = vmatmul.mubr.f32.gmra.mrb[30].mxu0 %v57_v0 }
  0x7c   :  { %2934 = vmatprep.mubr.f32.mxu0 %v58_v1 }
  0x7d   :  { %3040 = vmatmul.mubr.f32.gmra.mrb[44].mxu1 %v129_v2 }
  0x7e   :  { %3042 = vmatprep.mubr.f32.mxu1 %v130_v3 }
  0x7f   :  { %2935 = vmatmul.mubr.f32.gmra.mrb[32].mxu0 %v59_v4 }
  0x80   :  { %2937 = vmatprep.mubr.f32.mxu0 %v60_v5 }
  0x81   :  { %3043 = vmatmul.mubr.f32.gmra.mrb[46].mxu1 %v131_v6 }
  0x82   :  { %3045 = vmatprep.mubr.f32.mxu1 %v132_v7  ;;  %v4014_v7 = vsub.s32 0, %v4005_v58 }
  0x83   :  { %2938 = vmatmul.mubr.f32.gmra.mrb[34].mxu0 %v61_v8 }
  0x84   :  { %2940 = vmatprep.mubr.f32.mxu0 %v62_v9 }
  0x85   :  { %3046 = vmatmul.mubr.f32.gmra.mrb[48].mxu1 %v133_v10 }
  0x86   :  { %3048 = vmatprep.mubr.f32.mxu1 %v134_v11 }
  0x87   :  { %2941 = vmatmul.mubr.f32.gmra.mrb[36].mxu0 %v63_v12 }
  0x88   :  { %2943 = vmatprep.mubr.f32.mxu0 %v64_v13 }
  0x89   :  { %3049 = vmatmul.mubr.f32.gmra.mrb[50].mxu1 %v135_v14 }
  0x8a   :  { %3051 = vmatprep.mubr.f32.mxu1 %v136_v15 }
  0x8b   :  { %2944 = vmatmul.mubr.f32.gmra.mrb[38].mxu0 %v65_v16 }
  0x8c   :  { %2946 = vmatprep.mubr.f32.mxu0 %v66_v17 }
  0x8d   :  { %3052 = vmatmul.mubr.f32.gmra.mrb[52].mxu1 %v137_v18 }
  0x8e   :  { %3054 = vmatprep.mubr.f32.mxu1 %v138_v19 }
  0x8f   :  { %2947 = vmatmul.mubr.f32.gmra.mrb[40].mxu0 %v67_v20 }
  0x90   :  { %2949 = vmatprep.mubr.f32.mxu0 %v68_v21 }
  0x91   :  { %3055 = vmatmul.mubr.f32.gmra.mrb[54].mxu1 %v139_v22 }
  0x92   :  { %3057 = vmatprep.mubr.f32.mxu1 %v140_v23 }
  0x93   :  { %2950 = vmatmul.mubr.f32.gmra.mrb[42].mxu0 %v69_v24 }
  0x94   :  { %2952 = vmatprep.mubr.f32.mxu0 %v70_v25 }
  0x95   :  { %3058 = vmatmul.mubr.f32.gmra.mrb[56].mxu1 %v141_v26 }
  0x96   :  { %3060 = vmatprep.mubr.f32.mxu1 %v142_v27 }
  0x97   :  { %2953 = vmatmul.mubr.f32.gmra.mrb[44].mxu0 %v71_v28 }
  0x98   :  { %2955 = vmatprep.mubr.f32.mxu0 %v72_v29 }
  0x99   :  { %3061 = vmatmul.mubr.f32.gmra.mrb[58].mxu1 %v143_v30 }
  0x9a   :  { %3063 = vmatprep.mubr.f32.mxu1 %v144_v31 }
  0x9b   :  { %2956 = vmatmul.mubr.f32.gmra.mrb[46].mxu0 %v73_v32 }
  0x9c   :  { %2958 = vmatprep.mubr.f32.mxu0 %v74_v33 }
  0x9d   :  { %3064 = vmatmul.mubr.f32.gmra.mrb[60].mxu1 %v145_v34 }
  0x9e   :  { %3066 = vmatprep.mubr.f32.mxu1 %v146_v35 }
  0x9f   :  { %2959 = vmatmul.mubr.f32.gmra.mrb[48].mxu0 %v75_v36 }
  0xa0   :  { %2961 = vmatprep.mubr.f32.mxu0 %v76_v37 }
  0xa1   :  { %3067 = vmatmul.mubr.f32.gmra.mrb[62].mxu1 %v147_v38 }
  0xa2   :  { %3069 = vmatprep.mubr.f32.mxu1 %v148_v39 }
  0xa3   :  { %2962 = vmatmul.mubr.f32.gmra.mrb[50].mxu0 %v77_v40 }
  0xa4   :  { %2964 = vmatprep.mubr.f32.mxu0 %v78_v41 }
  0xa5   :  { %3070 = vmatmul.mubr.f32.gmra.mrb[64].mxu1 %v149_v42 }
  0xa6   :  { %3072 = vmatprep.mubr.f32.mxu1 %v150_v43 }
  0xa7   :  { %2965 = vmatmul.mubr.f32.gmra.mrb[52].mxu0 %v79_v44  ;;  %v4053_v44 = vld [vmem:[%s5135_s5] ss:$0 sm:$0xff] }
  0xa8   :  { %2967 = vmatprep.mubr.f32.mxu0 %v80_v45 }
  0xa9   :  { %3073 = vmatmul.mubr.f32.gmra.mrb[66].mxu1 %v151_v46 }
  0xaa   :  { %3075 = vmatprep.mubr.f32.mxu1 %v152_v47 }
  0xab   :  { %2968 = vmatmul.mubr.f32.gmra.mrb[54].mxu0 %v81_v48 }
  0xac   :  { %2970 = vmatprep.mubr.f32.mxu0 %v82_v49 }
  0xad   :  { %3076 = vmatmul.mubr.f32.gmra.mrb[68].mxu1 %v153_v50 }
  0xae   :  { %3078 = vmatprep.mubr.f32.mxu1 %v154_v51 }
  0xaf   :  { %2971 = vmatmul.mubr.f32.gmra.mrb[56].mxu0 %v83_v52 }
  0xb1   :  { %3079 = vmatmul.mubr.f32.gmra.mrb[70].mxu1 %v155_v53 }
  0xf6   :  { %v246_v61 = vpop.f32.mrb[0].mxu0 }
  0xf7   :  { %v247_v62 = vadd.f32 %v2658_v59, %v246_v61  ;;  %v2856_v63 = vpop.f32.mrb[1].mxu0 }
  0xf8   :  { %v2975_v0 = vpop.f32.mrb[0].mxu1 }
  0xf9   :  { %v972_v1 = vcombine.high %v247_v62, %v247_v62  ;;  %v979_v2 = vrot.slane %v247_v62, %v978_v60  ;;  %v612_v3 = vpop.f32.mrb[1].mxu1 }
  0xfb   :  { %v986_v4 = vrot.slane %v972_v1, %v978_v60  ;;  %v987_v5 = vcombine.high %v979_v2, %v979_v2  ;;  %v4011_v6 = vrot.slane %v979_v2, %v978_v60 }
  0xfc   :  { %v2978_v8 = vpop.f32.mrb[2].mxu1 }
  0xfd   :  { %v988_v9 = vcombine.high %v986_v4, %v986_v4  ;;  %v1002_v10 = vrot.slane %v986_v4, %v978_v60  ;;  %v1009_v11 = vrot.slane %v987_v5, %v978_v60  ;;  %v1017_v12 = vcombine.high %v4011_v6, %v4011_v6  ;;  %v622_v13 = vpop.f32.mrb[3].mxu1 }
  0xfe   :  { %v4063_v61 = vrot.slane %v4011_v6, %v4014_v7 }
  0xff   :  { %v1016_v14 = vrot.slane %v988_v9, %v978_v60  ;;  %v1018_v15 = vcombine.high %v1002_v10, %v1002_v10  ;;  %v1019_v16 = vcombine.high %v1009_v11, %v1009_v11  ;;  %v4019_v17 = vrot.slane %v1009_v11, %v4014_v7 }
 0x100   :  { %v4022_v18 = vrot.slane %v1017_v12, %v4014_v7  ;;  %v2981_v19 = vpop.f32.mrb[4].mxu1  ;;  %v4041_v32 = vrot.slane %v1002_v10, %v4014_v7 }
 0x101   :  { %v1020_v20 = vcombine.high %v1016_v14, %v1016_v14  ;;  %v4025_v21 = vrot.slane %v1019_v16, %v4014_v7  ;;  %v4028_v22 = vrot.slane %v1016_v14, %v4014_v7  ;;  %v4031_v23 = vrot.slane %v1018_v15, %v4014_v7  ;;  %v632_v24 = vpop.f32.mrb[5].mxu1 }
 0x103   :  { %v4034_v25 = vrot.slane %v1020_v20, %v4014_v7  ;;  %v1118_v26 = vadd.f32 %v2975_v0, %v4025_v21  ;;  %v1117_v27 = vadd.f32 %v4025_v21, %v612_v3  ;;  %v1120_v28 = vadd.f32 %v2978_v8, %v4025_v21 }
 0x104   :  { %v1119_v29 = vadd.f32 %v4025_v21, %v622_v13  ;;  %v2984_v30 = vpop.f32.mrb[6].mxu1  ;;  %v1122_v33 = vadd.f32 %v2981_v19, %v4025_v21  ;;  %v1121_v34 = vadd.f32 %v4025_v21, %v632_v24 }
 0x105   :  { %3159 = vtanh.f32 %v1118_v26  ;;  %v642_v31 = vpop.f32.mrb[7].mxu1  ;;  %v1124_v39 = vadd.f32 %v2984_v30, %v4025_v21 }
 0x106   :  { %3161 = vtanh.f32 %v1117_v27  ;;  %v1123_v40 = vadd.f32 %v4025_v21, %v642_v31 }
 0x107   :  { %3163 = vtanh.f32 %v1120_v28 }
 0x108   :  { %3165 = vtanh.f32 %v1119_v29  ;;  %v2987_v35 = vpop.f32.mrb[8].mxu1 }
 0x109   :  { %v1126_v36 = vadd.f32 %v2987_v35, %v4041_v32  ;;  %v652_v37 = vpop.f32.mrb[9].mxu1  ;;  %3167 = vtanh.f32 %v1122_v33 }
 0x10a   :  { %v1125_v38 = vadd.f32 %v4041_v32, %v652_v37  ;;  %3169 = vtanh.f32 %v1121_v34 }
 0x10b   :  { %3171 = vtanh.f32 %v1124_v39 }
 0x10c   :  { %v2990_v41 = vpop.f32.mrb[10].mxu1  ;;  %3173 = vtanh.f32 %v1123_v40 }
 0x10d   :  { %v1128_v42 = vadd.f32 %v2990_v41, %v4041_v32  ;;  %v662_v43 = vpop.f32.mrb[11].mxu1  ;;  %3175 = vtanh.f32 %v1126_v36 }
 0x10e   :  { %v1127_v45 = vadd.f32 %v4041_v32, %v662_v43  ;;  %3177 = vtanh.f32 %v1125_v38 }
 0x10f   :  { %v3160_v46 = vpop.eup %3159  ;;  %3179 = vtanh.f32 %v1128_v42 }
 0x110   :  { %v3162_v47 = vpop.eup %3161  ;;  %v2993_v48 = vpop.f32.mrb[12].mxu1  ;;  %v1381_v49 = vmul.f32 %v3160_v46, %v4053_v44  ;;  %3181 = vtanh.f32 %v1127_v45 }
 0x111   :  { %v3164_v50 = vpop.eup %3163  ;;  %v1130_v51 = vadd.f32 %v2993_v48, %v4041_v32  ;;  %v672_v52 = vpop.f32.mrb[13].mxu1  ;;  %v1380_v53 = vmul.f32 %v3162_v47, %v4053_v44 }
 0x112   :  { %v3166_v54 = vpop.eup %3165  ;;  %v1129_v55 = vadd.f32 %v4041_v32, %v672_v52  ;;  %1566 = vadd.xlane.f32.xlu1 %v1381_v49  ;;  %v1383_v59 = vmul.f32 %v3164_v50, %v4053_v44 }
 0x113   :  { %1564 = vadd.xlane.f32.xlu0 %v1380_v53  ;;  %v3168_v60 = vpop.eup %3167  ;;  %v1382_v0 = vmul.f32 %v3166_v54, %v4053_v44  ;;  %3183 = vtanh.f32 %v1130_v51 }
 0x114   :  { %v2996_v57 = vpop.f32.mrb[14].mxu1  ;;  %v3170_v1 = vpop.eup %3169  ;;  %v1385_v7 = vmul.f32 %v3168_v60, %v4053_v44  ;;  %3185 = vtanh.f32 %v1129_v55 }
 0x115   :  { %v1132_v62 = vadd.f32 %v2996_v57, %v4041_v32  ;;  %v682_v63 = vpop.f32.mrb[15].mxu1  ;;  %v3172_v9 = vpop.eup %3171  ;;  %v1384_v12 = vmul.f32 %v3170_v1, %v4053_v44 }
 0x116   :  { %v1131_v2 = vadd.f32 %v4041_v32, %v682_v63  ;;  %1570 = vadd.xlane.f32.xlu1 %v1383_v59  ;;  %v2891_v3 = vpop.f32.mrb[2].mxu0  ;;  %v3174_v13 = vpop.eup %3173  ;;  %v1387_v26 = vmul.f32 %v3172_v9, %v4053_v44 }
 0x117   :  { %1568 = vadd.xlane.f32.xlu0 %v1382_v0  ;;  %v1062_v4 = vadd.f32 %v2891_v3, %v4063_v61  ;;  %v332_v5 = vpop.f32.mrb[3].mxu0  ;;  %v3176_v27 = vpop.eup %3175  ;;  %v1386_v30 = vmul.f32 %v3174_v13, %v4053_v44  ;;  %3187 = vtanh.f32 %v1132_v62 }
 0x118   :  { %v1061_v8 = vadd.f32 %v4063_v61, %v332_v5  ;;  %v2999_v6 = vpop.f32.mrb[16].mxu1  ;;  %v3178_v31 = vpop.eup %3177  ;;  %3189 = vtanh.f32 %v1131_v2  ;;  %v1389_v39 = vmul.f32 %v3176_v27, %v4053_v44 }
 0x119   :  { %v1134_v10 = vadd.f32 %v2999_v6, %v4041_v32  ;;  %v692_v11 = vpop.f32.mrb[17].mxu1  ;;  %v3180_v40 = vpop.eup %3179  ;;  %v1388_v43 = vmul.f32 %v3178_v31, %v4053_v44 }
 0x11a   :  { %v4074_v14 = vadd.f32 %v4041_v32, %v692_v11  ;;  %1574 = vadd.xlane.f32.xlu1 %v1385_v7  ;;  %v2894_v15 = vpop.f32.mrb[4].mxu0  ;;  %v3182_v45 = vpop.eup %3181  ;;  %v1391_v52 = vmul.f32 %v3180_v40, %v4053_v44 }
 0x11b   :  { %1572 = vadd.xlane.f32.xlu0 %v1384_v12  ;;  %v1064_v16 = vadd.f32 %v2894_v15, %v4063_v61  ;;  %v342_v19 = vpop.f32.mrb[5].mxu0  ;;  %3191 = vtanh.f32 %v1134_v10  ;;  %v1390_v57 = vmul.f32 %v3182_v45, %v4053_v44 }
 0x11c   :  { %v1063_v20 = vadd.f32 %v4063_v61, %v342_v19  ;;  %v3002_v24 = vpop.f32.mrb[18].mxu1  ;;  %3193 = vtanh.f32 %v1062_v4 }
 0x11d   :  { %v4080_v28 = vadd.f32 %v3002_v24, %v4041_v32  ;;  %v702_v29 = vpop.f32.mrb[19].mxu1  ;;  %v3184_v53 = vpop.eup %3183  ;;  %3195 = vtanh.f32 %v1064_v16 }
 0x11e   :  { %v4084_v33 = vadd.f32 %v4041_v32, %v702_v29  ;;  %1578 = vadd.xlane.f32.xlu1 %v1387_v26  ;;  %v2897_v34 = vpop.f32.mrb[6].mxu0  ;;  %v3186_v59 = vpop.eup %3185  ;;  %3197 = vtanh.f32 %v1061_v8  ;;  %v1393_v3 = vmul.f32 %v3184_v53, %v4053_v44 }
 0x11f   :  { %1576 = vadd.xlane.f32.xlu0 %v1386_v30  ;;  %v4087_v35 = vadd.f32 %v2897_v34, %v4063_v61  ;;  %v352_v36 = vpop.f32.mrb[7].mxu0  ;;  %v1392_v6 = vmul.f32 %v3186_v59, %v4053_v44  ;;  %3199 = vtanh.f32 %v1063_v20 }
 0x120   :  { %v4090_v37 = vadd.f32 %v4063_v61, %v352_v36  ;;  %v3005_v38 = vpop.f32.mrb[20].mxu1  ;;  %3201 = vtanh.f32 %v4074_v14 }
 0x121   :  { %v4094_v41 = vadd.f32 %v3005_v38, %v4041_v32  ;;  %v712_v42 = vpop.f32.mrb[21].mxu1  ;;  %v3188_v4 = vpop.eup %3187  ;;  %3203 = vtanh.f32 %v4080_v28 }
 0x122   :  { %v4098_v46 = vadd.f32 %v4041_v32, %v712_v42  ;;  %1582 = vadd.xlane.f32.xlu1 %v1389_v39  ;;  %v2900_v47 = vpop.f32.mrb[8].mxu0  ;;  %v3190_v7 = vpop.eup %3189  ;;  %v1395_v15 = vmul.f32 %v3188_v4, %v4053_v44  ;;  %3205 = vtanh.f32 %v4084_v33 }
 0x123   :  { %1580 = vadd.xlane.f32.xlu0 %v1388_v43  ;;  %v4101_v48 = vadd.f32 %v2900_v47, %v4063_v61  ;;  %v362_v49 = vpop.f32.mrb[9].mxu0  ;;  %v1394_v20 = vmul.f32 %v3190_v7, %v4053_v44  ;;  %3207 = vtanh.f32 %v4087_v35 }
 0x124   :  { %v4104_v50 = vadd.f32 %v4063_v61, %v362_v49  ;;  %v3008_v51 = vpop.f32.mrb[22].mxu1  ;;  %3209 = vtanh.f32 %v4090_v37 }
 0x125   :  { %v4108_v54 = vadd.f32 %v3008_v51, %v4041_v32  ;;  %v722_v55 = vpop.f32.mrb[23].mxu1  ;;  %v3192_v16 = vpop.eup %3191  ;;  %3211 = vtanh.f32 %v4094_v41 }
 0x126   :  { %v4112_v60 = vadd.f32 %v4041_v32, %v722_v55  ;;  %1586 = vadd.xlane.f32.xlu1 %v1391_v52  ;;  %v2903_v62 = vpop.f32.mrb[10].mxu0  ;;  %v3194_v26 = vpop.eup %3193  ;;  %v1397_v36 = vmul.f32 %v3192_v16, %v4053_v44  ;;  %3213 = vtanh.f32 %v4098_v46 }
 0x127   :  { %1584 = vadd.xlane.f32.xlu0 %v1390_v57  ;;  %v4115_v63 = vadd.f32 %v2903_v62, %v4063_v61  ;;  %v372_v0 = vpop.f32.mrb[11].mxu0  ;;  %v3196_v38 = vpop.eup %3195  ;;  %v1325_v28 = vmul.f32 %v3194_v26, %v4053_v44  ;;  %3215 = vtanh.f32 %v4101_v48 }
 0x128   :  { %v4118_v1 = vadd.f32 %v4063_v61, %v372_v0  ;;  %v3011_v2 = vpop.f32.mrb[24].mxu1  ;;  %v3198_v42 = vpop.eup %3197  ;;  %v1327_v52 = vmul.f32 %v3196_v38, %v4053_v44  ;;  %3217 = vtanh.f32 %v4104_v50 }
 0x129   :  { %v4122_v5 = vadd.f32 %v3011_v2, %v4028_v22  ;;  %v732_v32 = vpop.f32.mrb[25].mxu1  ;;  %v3200_v53 = vpop.eup %3199  ;;  %v1324_v35 = vmul.f32 %v3198_v42, %v4053_v44  ;;  %3219 = vtanh.f32 %v4108_v54 }
 0x12a   :  { %v4126_v9 = vadd.f32 %v4028_v22, %v732_v32  ;;  %1590 = vadd.xlane.f32.xlu1 %v1393_v3  ;;  %v2906_v10 = vpop.f32.mrb[12].mxu0  ;;  %v3202_v59 = vpop.eup %3201  ;;  %v1326_v4 = vmul.f32 %v3200_v53, %v4053_v44  ;;  %3221 = vtanh.f32 %v4112_v60 }
 0x12b   :  { %1588 = vadd.xlane.f32.xlu0 %v1392_v6  ;;  %v4129_v8 = vadd.f32 %v2906_v10, %v4063_v61  ;;  %v382_v11 = vpop.f32.mrb[13].mxu0  ;;  %v3204_v32 = vpop.eup %3203  ;;  %v1396_v41 = vmul.f32 %v3202_v59, %v4053_v44  ;;  %3223 = vtanh.f32 %v4115_v63 }
 0x12c   :  { %v4133_v12 = vadd.f32 %v4063_v61, %v382_v11  ;;  %v3014_v13 = vpop.f32.mrb[26].mxu1  ;;  %v3206_v10 = vpop.eup %3205  ;;  %3225 = vtanh.f32 %v4118_v1 }
 0x12d   :  { %v4137_v19 = vadd.f32 %v3014_v13, %v4028_v22  ;;  %v742_v24 = vpop.f32.mrb[27].mxu1  ;;  %v3208_v26 = vpop.eup %3207  ;;  %v1398_v48 = vmul.f32 %v3206_v10, %v4053_v44  ;;  %3227 = vtanh.f32 %v4122_v5 }
 0x12e   :  { %v4141_v27 = vadd.f32 %v4028_v22, %v742_v24  ;;  %1594 = vadd.xlane.f32.xlu1 %v1395_v15  ;;  %v2909_v29 = vpop.f32.mrb[14].mxu0  ;;  %3229 = vtanh.f32 %v4126_v9 }
 0x12f   :  { %1592 = vadd.xlane.f32.xlu0 %v1394_v20  ;;  %v4145_v14 = vadd.f32 %v2909_v29, %v4063_v61  ;;  %v392_v30 = vpop.f32.mrb[15].mxu0  ;;  %v1399_v20 = vmul.f32 %v3204_v32, %v4053_v44  ;;  %3231 = vtanh.f32 %v4129_v8 }
 0x130   :  { %v4149_v31 = vadd.f32 %v4063_v61, %v392_v30  ;;  %v3017_v34 = vpop.f32.mrb[28].mxu1  ;;  %3233 = vtanh.f32 %v4133_v12 }
 0x131   :  { %v4153_v39 = vadd.f32 %v3017_v34, %v4028_v22  ;;  %v752_v40 = vpop.f32.mrb[29].mxu1  ;;  %v3210_v34 = vpop.eup %3209  ;;  %3235 = vtanh.f32 %v4137_v19 }
 0x132   :  { %v4157_v43 = vadd.f32 %v4028_v22, %v752_v40  ;;  %1598 = vadd.xlane.f32.xlu1 %v1397_v36  ;;  %v2912_v45 = vpop.f32.mrb[16].mxu0  ;;  %v1328_v54 = vmul.f32 %v3210_v34, %v4053_v44  ;;  %3237 = vtanh.f32 %v4141_v27 }
 0x133   :  { %1454 = vadd.xlane.f32.xlu0 %v1325_v28  ;;  %v4161_v33 = vadd.f32 %v2912_v45, %v4063_v61  ;;  %v402_v47 = vpop.f32.mrb[17].mxu0  ;;  %v1329_v45 = vmul.f32 %v3208_v26, %v4053_v44  ;;  %3239 = vtanh.f32 %v4145_v14 }
 0x134   :  { %v4165_v49 = vadd.f32 %v4063_v61, %v402_v47  ;;  %v3020_v51 = vpop.f32.mrb[30].mxu1  ;;  %v3212_v47 = vpop.eup %3211  ;;  %3241 = vtanh.f32 %v4149_v31 }
 0x135   :  { %v4169_v55 = vadd.f32 %v3020_v51, %v4028_v22  ;;  %v762_v57 = vpop.f32.mrb[31].mxu1  ;;  %v3214_v53 = vpop.eup %3213  ;;  %3243 = vtanh.f32 %v4153_v39 }
 0x136   :  { %v4173_v62 = vadd.f32 %v4028_v22, %v762_v57  ;;  %1458 = vadd.xlane.f32.xlu1 %v1327_v52  ;;  %v2915_v0 = vpop.f32.mrb[18].mxu0  ;;  %v1400_v63 = vmul.f32 %v3214_v53, %v4053_v44  ;;  %3245 = vtanh.f32 %v4157_v43 }
 0x137   :  { %1452 = vadd.xlane.f32.xlu0 %v1324_v35  ;;  %v4177_v61 = vadd.f32 %v2915_v0, %v4019_v17  ;;  %v412_v37 = vpop.f32.mrb[19].mxu0 }
 0x138   :  { %v4181_v2 = vadd.f32 %v4019_v17, %v412_v37  ;;  %v3023_v3 = vpop.f32.mrb[32].mxu1 }
 0x139   :  { %v4185_v6 = vadd.f32 %v3023_v3, %v4028_v22  ;;  %v772_v7 = vpop.f32.mrb[33].mxu1  ;;  %v1401_v3 = vmul.f32 %v3212_v47, %v4053_v44 }
 0x13a   :  { %v4189_v11 = vadd.f32 %v4028_v22, %v772_v7  ;;  %1456 = vadd.xlane.f32.xlu1 %v1326_v4  ;;  %v2918_v13 = vpop.f32.mrb[20].mxu0  ;;  %v3216_v4 = vpop.eup %3215  ;;  %3247 = vtanh.f32 %v4161_v33 }
 0x13b   :  { %1596 = vadd.xlane.f32.xlu0 %v1396_v41  ;;  %v4193_v46 = vadd.f32 %v2918_v13, %v4019_v17  ;;  %v422_v15 = vpop.f32.mrb[21].mxu0  ;;  %v3218_v41 = vpop.eup %3217  ;;  %v1331_v26 = vmul.f32 %v3216_v4, %v4053_v44  ;;  %3249 = vtanh.f32 %v4165_v49 }
 0x13c   :  { %v4197_v16 = vadd.f32 %v4019_v17, %v422_v15  ;;  %v3026_v24 = vpop.f32.mrb[34].mxu1  ;;  %v1330_v5 = vmul.f32 %v3218_v41, %v4053_v44 }
 0x13d   :  { %v4201_v29 = vadd.f32 %v3026_v24, %v4028_v22  ;;  %v782_v30 = vpop.f32.mrb[35].mxu1 }
 0x13e   :  { %v4205_v36 = vadd.f32 %v4028_v22, %v782_v30  ;;  %1602 = vadd.xlane.f32.xlu1 %v1399_v20  ;;  %v2921_v38 = vpop.f32.mrb[22].mxu0  ;;  %v3220_v30 = vpop.eup %3219  ;;  %3251 = vtanh.f32 %v4169_v55 }
 0x13f   :  { %1600 = vadd.xlane.f32.xlu0 %v1398_v48  ;;  %v4209_v50 = vadd.f32 %v2921_v38, %v4019_v17  ;;  %v432_v40 = vpop.f32.mrb[23].mxu0  ;;  %v3222_v34 = vpop.eup %3221  ;;  %3253 = vtanh.f32 %v4173_v62 }
 0x140   :  { %v4213_v28 = vadd.f32 %v4019_v17, %v432_v40  ;;  %v3029_v42 = vpop.f32.mrb[36].mxu1  ;;  %v1402_v8 = vmul.f32 %v3222_v34, %v4053_v44 }
 0x141   :  { %v4217_v51 = vadd.f32 %v3029_v42, %v4028_v22  ;;  %v792_v52 = vpop.f32.mrb[37].mxu1 }
 0x142   :  { %v4221_v57 = vadd.f32 %v4028_v22, %v792_v52  ;;  %1462 = vadd.xlane.f32.xlu1 %v1329_v45  ;;  %v2924_v35 = vpop.f32.mrb[24].mxu0  ;;  %v1403_v52 = vmul.f32 %v3220_v30, %v4053_v44 }
 0x143   :  { %1460 = vadd.xlane.f32.xlu0 %v1328_v54  ;;  %v4225_v60 = vadd.f32 %v2924_v35, %v4019_v17  ;;  %v442_v59 = vpop.f32.mrb[25].mxu0  ;;  %v3224_v54 = vpop.eup %3223  ;;  %3255 = vtanh.f32 %v4177_v61 }
 0x144   :  { %v4229_v0 = vadd.f32 %v4019_v17, %v442_v59  ;;  %v3032_v37 = vpop.f32.mrb[38].mxu1  ;;  %v3226_v59 = vpop.eup %3225  ;;  %v1333_v41 = vmul.f32 %v3224_v54, %v4053_v44  ;;  %3257 = vtanh.f32 %v4181_v2 }
 0x145   :  { %v4233_v32 = vadd.f32 %v3032_v37, %v4028_v22  ;;  %v802_v7 = vpop.f32.mrb[39].mxu1  ;;  %v1332_v19 = vmul.f32 %v3226_v59, %v4053_v44 }
 0x146   :  { %v4237_v10 = vadd.f32 %v4028_v22, %v802_v7  ;;  %1606 = vadd.xlane.f32.xlu1 %v1401_v3  ;;  %v2927_v13 = vpop.f32.mrb[26].mxu0 }
 0x147   :  { %1604 = vadd.xlane.f32.xlu0 %v1400_v63  ;;  %v4241_v1 = vadd.f32 %v2927_v13, %v4019_v17  ;;  %v452_v15 = vpop.f32.mrb[27].mxu0  ;;  %v3228_v13 = vpop.eup %3227  ;;  %3259 = vtanh.f32 %v4185_v6 }
 0x148   :  { %v4245_v24 = vadd.f32 %v4019_v17, %v452_v15  ;;  %v3035_v20 = vpop.f32.mrb[40].mxu1 }
 0x149   :  { %v4249_v22 = vadd.f32 %v3035_v20, %v4031_v23  ;;  %v812_v48 = vpop.f32.mrb[41].mxu1 }
 0x14a   :  { %v4253_v38 = vadd.f32 %v4031_v23, %v812_v48  ;;  %1466 = vadd.xlane.f32.xlu1 %v1331_v26  ;;  %v2930_v40 = vpop.f32.mrb[28].mxu0  ;;  %v3230_v26 = vpop.eup %3229  ;;  %3261 = vtanh.f32 %v4189_v11 }
 0x14b   :  { %1464 = vadd.xlane.f32.xlu0 %v1330_v5  ;;  %v4257_v9 = vadd.f32 %v2930_v40, %v4019_v17  ;;  %v462_v42 = vpop.f32.mrb[29].mxu0  ;;  %v1404_v14 = vmul.f32 %v3230_v26, %v4053_v44 }
 0x14c   :  { %v4261_v45 = vadd.f32 %v4019_v17, %v462_v42  ;;  %v3038_v47 = vpop.f32.mrb[42].mxu1  ;;  %v1405_v42 = vmul.f32 %v3228_v13, %v4053_v44 }
 0x14d   :  { %v4265_v53 = vadd.f32 %v3038_v47, %v4031_v23  ;;  %v822_v35 = vpop.f32.mrb[43].mxu1  ;;  %v3232_v47 = vpop.eup %3231  ;;  %3263 = vtanh.f32 %v4193_v46 }
 0x14e   :  { %v4269_v37 = vadd.f32 %v4031_v23, %v822_v35  ;;  %1610 = vadd.xlane.f32.xlu1 %v1403_v52  ;;  %v2933_v3 = vpop.f32.mrb[30].mxu0  ;;  %v3234_v35 = vpop.eup %3233  ;;  %3265 = vtanh.f32 %v4197_v16 }
 0x14f   :  { %1608 = vadd.xlane.f32.xlu0 %v1402_v8  ;;  %v4273_v12 = vadd.f32 %v2933_v3, %v4019_v17  ;;  %v472_v4 = vpop.f32.mrb[31].mxu0  ;;  %v1334_v39 = vmul.f32 %v3234_v35, %v4053_v44 }
 0x150   :  { %v4277_v7 = vadd.f32 %v4019_v17, %v472_v4  ;;  %v3041_v63 = vpop.f32.mrb[44].mxu1 }
 0x151   :  { %v4281_v15 = vadd.f32 %v3041_v63, %v4031_v23  ;;  %v832_v20 = vpop.f32.mrb[45].mxu1  ;;  %v1335_v63 = vmul.f32 %v3232_v47, %v4053_v44 }
 0x152   :  { %v4285_v30 = vadd.f32 %v4031_v23, %v832_v20  ;;  %1470 = vadd.xlane.f32.xlu1 %v1333_v41  ;;  %v2936_v48 = vpop.f32.mrb[32].mxu0  ;;  %v3236_v41 = vpop.eup %3235  ;;  %3267 = vtanh.f32 %v4201_v29 }
 0x153   :  { %1468 = vadd.xlane.f32.xlu0 %v1332_v19  ;;  %v4289_v27 = vadd.f32 %v2936_v48, %v4019_v17  ;;  %v482_v5 = vpop.f32.mrb[33].mxu0  ;;  %v3238_v19 = vpop.eup %3237  ;;  %v1407_v47 = vmul.f32 %v3236_v41, %v4053_v44  ;;  %3269 = vtanh.f32 %v4205_v36 }
 0x154   :  { %v4293_v34 = vadd.f32 %v4019_v17, %v482_v5  ;;  %v3044_v40 = vpop.f32.mrb[46].mxu1  ;;  %v1406_v33 = vmul.f32 %v3238_v19, %v4053_v44 }
 0x155   :  { %v4297_v52 = vadd.f32 %v3044_v40, %v4031_v23  ;;  %v842_v54 = vpop.f32.mrb[47].mxu1 }
 0x156   :  { %v4301_v8 = vadd.f32 %v4031_v23, %v842_v54  ;;  %1614 = vadd.xlane.f32.xlu1 %v1405_v42  ;;  %v2939_v59 = vpop.f32.mrb[34].mxu0  ;;  %v3240_v54 = vpop.eup %3239  ;;  %3271 = vtanh.f32 %v4209_v50 }
 0x157   :  { %1612 = vadd.xlane.f32.xlu0 %v1404_v14  ;;  %v4305_v17 = vadd.f32 %v2939_v59, %v4022_v18  ;;  %v492_v31 = vpop.f32.mrb[35].mxu0  ;;  %v3242_v59 = vpop.eup %3241  ;;  %3273 = vtanh.f32 %v4213_v28 }
 0x158   :  { %v4309_v3 = vadd.f32 %v4022_v18, %v492_v31  ;;  %v3047_v4 = vpop.f32.mrb[48].mxu1  ;;  %v3244_v19 = vpop.eup %3243  ;;  %v1336_v55 = vmul.f32 %v3242_v59, %v4053_v44  ;;  %3275 = vtanh.f32 %v4217_v51 }
 0x159   :  { %v4313_v13 = vadd.f32 %v3047_v4, %v4031_v23  ;;  %v852_v20 = vpop.f32.mrb[49].mxu1  ;;  %v1409_v59 = vmul.f32 %v3244_v19, %v4053_v44 }
 0x15a   :  { %v4317_v26 = vadd.f32 %v4031_v23, %v852_v20  ;;  %1474 = vadd.xlane.f32.xlu1 %v1335_v63  ;;  %v2942_v48 = vpop.f32.mrb[36].mxu0 }
 0x15b   :  { %1472 = vadd.xlane.f32.xlu0 %v1334_v39  ;;  %v4321_v43 = vadd.f32 %v2942_v48, %v4022_v18  ;;  %v502_v5 = vpop.f32.mrb[37].mxu0  ;;  %v1337_v39 = vmul.f32 %v3240_v54, %v4053_v44 }
 0x15c   :  { %v4325_v40 = vadd.f32 %v4022_v18, %v502_v5  ;;  %v3050_v42 = vpop.f32.mrb[50].mxu1 }
 0x15d   :  { %v4329_v14 = vadd.f32 %v3050_v42, %v4031_v23  ;;  %v862_v35 = vpop.f32.mrb[51].mxu1  ;;  %v3246_v42 = vpop.eup %3245  ;;  %3277 = vtanh.f32 %v4221_v57 }
 0x15e   :  { %v4333_v31 = vadd.f32 %v4031_v23, %v862_v35  ;;  %1618 = vadd.xlane.f32.xlu1 %v1407_v47  ;;  %v2945_v4 = vpop.f32.mrb[38].mxu0  ;;  %v1408_v61 = vmul.f32 %v3246_v42, %v4053_v44 }
 0x15f   :  { %1616 = vadd.xlane.f32.xlu0 %v1406_v33  ;;  %v4337_v49 = vadd.f32 %v2945_v4, %v4022_v18  ;;  %v512_v63 = vpop.f32.mrb[39].mxu0 }
 0x160   :  { %v4341_v41 = vadd.f32 %v4022_v18, %v512_v63  ;;  %v3053_v20 = vpop.f32.mrb[52].mxu1  ;;  %v3248_v63 = vpop.eup %3247  ;;  %3279 = vtanh.f32 %v4225_v60 }
 0x161   :  { %v4345_v48 = vadd.f32 %v3053_v20, %v4031_v23  ;;  %v872_v5 = vpop.f32.mrb[53].mxu1  ;;  %v1339_v42 = vmul.f32 %v3248_v63, %v4053_v44 }
 0x162   :  { %v4349_v47 = vadd.f32 %v4031_v23, %v872_v5  ;;  %1478 = vadd.xlane.f32.xlu1 %v1337_v39  ;;  %v2948_v35 = vpop.f32.mrb[40].mxu0  ;;  %v3250_v5 = vpop.eup %3249  ;;  %3281 = vtanh.f32 %v4229_v0 }
 0x163   :  { %1476 = vadd.xlane.f32.xlu0 %v1336_v55  ;;  %v4353_v62 = vadd.f32 %v2948_v35, %v4022_v18  ;;  %v522_v54 = vpop.f32.mrb[41].mxu0  ;;  %v3252_v56 = vpop.eup %3251  ;;  %v1338_v6 = vmul.f32 %v3250_v5, %v4053_v44  ;;  %3283 = vtanh.f32 %v4237_v10 }
 0x164   :  { %v4357_v33 = vadd.f32 %v4022_v18, %v522_v54  ;;  %v3056_v4 = vpop.f32.mrb[54].mxu1  ;;  %v1411_v5 = vmul.f32 %v3252_v56, %v4053_v44 }
 0x165   :  { %v4361_v20 = vadd.f32 %v3056_v4, %v4031_v23  ;;  %v882_v39 = vpop.f32.mrb[55].mxu1 }
 0x166   :  { %v4365_v55 = vadd.f32 %v4031_v23, %v882_v39  ;;  %1622 = vadd.xlane.f32.xlu1 %v1409_v59  ;;  %v2951_v35 = vpop.f32.mrb[42].mxu0  ;;  %v3254_v39 = vpop.eup %3253  ;;  %3285 = vtanh.f32 %v4245_v24 }
 0x167   :  { %5138 = vst [vmem:[#allocation3_spill] sm:$0xff] %v4361_v20  ;;  %1620 = vadd.xlane.f32.xlu0 %v1408_v61  ;;  %v4369_v2 = vadd.f32 %v2951_v35, %v4022_v18  ;;  %v532_v19 = vpop.f32.mrb[43].mxu0  ;;  %v3256_v20 = vpop.eup %3255  ;;  %v1410_v46 = vmul.f32 %v3254_v39, %v4053_v44  ;;  %3287 = vtanh.f32 %v4241_v1 }
 0x168   :  { %5139 = vst [vmem:[#allocation4_spill] sm:$0xff] %v4365_v55  ;;  %v4373_v54 = vadd.f32 %v4022_v18, %v532_v19  ;;  %v3059_v4 = vpop.f32.mrb[56].mxu1  ;;  %v1341_v39 = vmul.f32 %v3256_v20, %v4053_v44 }
 0x169   :  { %v4377_v23 = vadd.f32 %v3059_v4, %v4034_v25  ;;  %v892_v59 = vpop.f32.mrb[57].mxu1 }
 0x16a   :  { %v4381_v61 = vadd.f32 %v4034_v25, %v892_v59  ;;  %1482 = vadd.xlane.f32.xlu1 %v1339_v42  ;;  %v2954_v35 = vpop.f32.mrb[44].mxu0 }
 0x16b   :  { %1480 = vadd.xlane.f32.xlu0 %v1338_v6  ;;  %v4385_v11 = vadd.f32 %v2954_v35, %v4022_v18  ;;  %v542_v63 = vpop.f32.mrb[45].mxu0  ;;  %v3258_v6 = vpop.eup %3257  ;;  %3289 = vtanh.f32 %v4249_v22 }
 0x16c   :  { %v4389_v19 = vadd.f32 %v4022_v18, %v542_v63  ;;  %v3062_v4 = vpop.f32.mrb[58].mxu1  ;;  %v1340_v29 = vmul.f32 %v3258_v6, %v4053_v44 }
 0x16d   :  { %v4393_v59 = vadd.f32 %v3062_v4, %v4034_v25  ;;  %v902_v42 = vpop.f32.mrb[59].mxu1 }
 0x16e   :  { %v4397_v35 = vadd.f32 %v4034_v25, %v902_v42  ;;  %1626 = vadd.xlane.f32.xlu1 %v1411_v5  ;;  %v2957_v55 = vpop.f32.mrb[46].mxu0 }
 0x16f   :  { %5140 = vst [vmem:[#allocation5_spill] sm:$0xff] %v4393_v59  ;;  %1624 = vadd.xlane.f32.xlu0 %v1410_v46  ;;  %v4401_v16 = vadd.f32 %v2957_v55, %v4022_v18  ;;  %v552_v56 = vpop.f32.mrb[47].mxu0  ;;  %v3260_v59 = vpop.eup %3259  ;;  %3291 = vtanh.f32 %v4253_v38 }
 0x170   :  { %v4405_v63 = vadd.f32 %v4022_v18, %v552_v56  ;;  %v3065_v4 = vpop.f32.mrb[60].mxu1  ;;  %v3262_v46 = vpop.eup %3261  ;;  %v1413_v6 = vmul.f32 %v3260_v59, %v4053_v44  ;;  %3293 = vtanh.f32 %v4261_v45 }
 0x171   :  { %5141 = vst [vmem:[#allocation6_spill] sm:$0xff] %v4401_v16  ;;  %v4409_v42 = vadd.f32 %v3065_v4, %v4034_v25  ;;  %v912_v5 = vpop.f32.mrb[61].mxu1  ;;  %v1412_v50 = vmul.f32 %v3262_v46, %v4053_v44 }
 0x172   :  { %v4413_v55 = vadd.f32 %v4034_v25, %v912_v5  ;;  %1486 = vadd.xlane.f32.xlu1 %v1341_v39  ;;  %v2960_v16 = vpop.f32.mrb[48].mxu0 }
 0x173   :  { %5142 = vst [vmem:[#allocation7_spill] sm:$0xff] %v4409_v42  ;;  %1484 = vadd.xlane.f32.xlu0 %v1340_v29  ;;  %v4417_v36 = vadd.f32 %v2960_v16, %v4022_v18  ;;  %v562_v20 = vpop.f32.mrb[49].mxu0  ;;  %v3264_v42 = vpop.eup %3263  ;;  %3295 = vtanh.f32 %v4257_v9 }
 0x174   :  { %v4421_v56 = vadd.f32 %v4022_v18, %v562_v20  ;;  %v3068_v4 = vpop.f32.mrb[62].mxu1  ;;  %v3266_v29 = vpop.eup %3265  ;;  %v1343_v59 = vmul.f32 %v3264_v42, %v4053_v44  ;;  %3297 = vtanh.f32 %v4265_v53 }
 0x175   :  { %5143 = vst [vmem:[#allocation8_spill] sm:$0xff] %v4417_v36  ;;  %v4425_v5 = vadd.f32 %v3068_v4, %v4034_v25  ;;  %v922_v39 = vpop.f32.mrb[63].mxu1  ;;  %v3268_v20 = vpop.eup %3267  ;;  %3299 = vtanh.f32 %v4269_v37 }
 0x176   :  { %v4429_v16 = vadd.f32 %v4034_v25, %v922_v39  ;;  %1630 = vadd.xlane.f32.xlu1 %v1413_v6  ;;  %v4431_v36 = vpop.f32.mrb[50].mxu0  ;;  %v1342_v39 = vmul.f32 %v3266_v29, %v4053_v44  ;;  %v3270_v6 = vpop.eup %3269  ;;  %3301 = vtanh.f32 %v4277_v7 }
 0x177   :  { %5144 = vst [vmem:[#allocation9_spill] sm:$0xff] %v4431_v36  ;;  %1628 = vadd.xlane.f32.xlu0 %v1412_v50  ;;  %v4434_v18 = vpop.f32.mrb[51].mxu0  ;;  %v1415_v50 = vmul.f32 %v3268_v20, %v4053_v44 }
 0x178   :  { %v3071_v28 = vpop.f32.mrb[64].mxu1 }
 0x179   :  { %v4439_v46 = vadd.f32 %v3071_v28, %v4034_v25  ;;  %v932_v4 = vpop.f32.mrb[65].mxu1  ;;  %v3272_v28 = vpop.eup %3271  ;;  %3303 = vtanh.f32 %v4273_v12 }
 0x17a   :  { %v4443_v36 = vadd.f32 %v4034_v25, %v932_v4  ;;  %1490 = vadd.xlane.f32.xlu1 %v1343_v59  ;;  %v4445_v51 = vpop.f32.mrb[52].mxu0  ;;  %v1414_v4 = vmul.f32 %v3270_v6, %v4053_v44  ;;  %v3274_v59 = vpop.eup %3273  ;;  %3305 = vtanh.f32 %v4293_v34 }
 0x17b   :  { %5145 = vst [vmem:[#allocation10_spill] sm:$0xff] %v4439_v46  ;;  %5146 = vst [vmem:[#allocation11_spill] sm:$0xff] %v4445_v51  ;;  %1488 = vadd.xlane.f32.xlu0 %v1342_v39  ;;  %v4448_v57 = vpop.f32.mrb[53].mxu0  ;;  %v1345_v39 = vmul.f32 %v3272_v28, %v4053_v44  ;;  %v4507_v34 = vpop.permute.xlu0 %1715 }
 0x17c   :  { %v3074_v42 = vpop.f32.mrb[66].mxu1 }
 0x17d   :  { %v4453_v29 = vadd.f32 %v3074_v42, %v4034_v25  ;;  %v942_v46 = vpop.f32.mrb[67].mxu1  ;;  %v3276_v42 = vpop.eup %3275  ;;  %3307 = vtanh.f32 %v4281_v15  ;;  %v4514_v15 = vld [vmem:[%s5135_s5] ss:$0 sm:$0xff] }
 0x17e   :  { %v4457_v51 = vadd.f32 %v4034_v25, %v942_v46  ;;  %1634 = vadd.xlane.f32.xlu1 %v1415_v50  ;;  %v4459_v60 = vpop.f32.mrb[54].mxu0  ;;  %v1344_v46 = vmul.f32 %v3274_v59, %v4053_v44  ;;  %v3278_v50 = vpop.eup %3277  ;;  %3309 = vtanh.f32 %v4309_v3 }
 0x17f   :  { %5147 = vst [vmem:[#allocation12_spill] sm:$0xff] %v4453_v29  ;;  %5149 = vst [vmem:[#allocation14_spill] sm:$0xff] %v4459_v60  ;;  %1632 = vadd.xlane.f32.xlu0 %v1414_v4  ;;  %v4462_v0 = vpop.f32.mrb[55].mxu0  ;;  %v1417_v4 = vmul.f32 %v3276_v42, %v4053_v44 }
 0x180   :  { %5148 = vst [vmem:[#allocation13_spill] sm:$0xff] %v4457_v51  ;;  %v3077_v20 = vpop.f32.mrb[68].mxu1 }
 0x181   :  { %v4467_v6 = vadd.f32 %v3077_v20, %v4034_v25  ;;  %v952_v29 = vpop.f32.mrb[69].mxu1  ;;  %v3280_v20 = vpop.eup %3279  ;;  %3311 = vtanh.f32 %v4285_v30 }
 0x182   :  { %v4471_v60 = vadd.f32 %v4034_v25, %v952_v29  ;;  %1494 = vadd.xlane.f32.xlu1 %v1345_v39  ;;  %v4473_v10 = vpop.f32.mrb[56].mxu0  ;;  %v1416_v29 = vmul.f32 %v3278_v50, %v4053_v44  ;;  %v3282_v39 = vpop.eup %3281  ;;  %v1347_v1 = vmul.f32 %v3280_v20, %v4053_v44  ;;  %3313 = vtanh.f32 %v4325_v40 }
 0x183   :  { %5150 = vst [vmem:[#allocation15_spill] sm:$0xff] %v4473_v10  ;;  %1492 = vadd.xlane.f32.xlu0 %v1344_v46  ;;  %v4476_v24 = vpop.f32.mrb[57].mxu0  ;;  %v3284_v22 = vpop.eup %3283  ;;  %v1346_v42 = vmul.f32 %v3282_v39, %v4053_v44  ;;  %3315 = vtanh.f32 %v4289_v27 }
 0x184   :  { %v3080_v28 = vpop.f32.mrb[70].mxu1  ;;  %v3286_v46 = vpop.eup %3285  ;;  %3317 = vtanh.f32 %v4341_v41 }
 0x185   :  { %v4481_v59 = vadd.f32 %v3080_v28, %v4034_v25  ;;  %v962_v51 = vpop.f32.mrb[71].mxu1  ;;  %v1348_v38 = vmul.f32 %v3286_v46, %v4053_v44 }
 0x186   :  { %v4485_v10 = vadd.f32 %v4034_v25, %v962_v51  ;;  %1638 = vadd.xlane.f32.xlu1 %v1417_v4  ;;  %v1418_v25 = vmul.f32 %v3284_v22, %v4053_v44  ;;  %v3288_v51 = vpop.eup %3287  ;;  %3319 = vtanh.f32 %v4297_v52  ;;  %v5151_v52 = vlaneseq }
 0x187   :  { %1636 = vadd.xlane.f32.xlu0 %v1416_v29  ;;  %v3290_v50 = vpop.eup %3289  ;;  %v1349_v45 = vmul.f32 %v3288_v51, %v4053_v44  ;;  %3321 = vtanh.f32 %v4345_v48 }
 0x188   :  { %v3292_v28 = vpop.eup %3291  ;;  %v1421_v9 = vmul.f32 %v3290_v50, %v4053_v44  ;;  %3323 = vtanh.f32 %v4301_v8 }
 0x189   :  { %v3294_v4 = vpop.eup %3293  ;;  %v1420_v53 = vmul.f32 %v3292_v28, %v4053_v44  ;;  %3325 = vtanh.f32 %v4357_v33 }
 0x18a   :  { %1498 = vadd.xlane.f32.xlu1 %v1347_v1  ;;  %v3296_v20 = vpop.eup %3295  ;;  %v1350_v37 = vmul.f32 %v3294_v4, %v4053_v44  ;;  %3327 = vtanh.f32 %v4305_v17 }
 0x18b   :  { %1496 = vadd.xlane.f32.xlu0 %v1346_v42  ;;  %v3298_v29 = vpop.eup %3297  ;;  %v1351_v7 = vmul.f32 %v3296_v20, %v4053_v44  ;;  %3329 = vtanh.f32 %v4373_v54 }
 0x18c   :  { %v3300_v39 = vpop.eup %3299  ;;  %v1423_v12 = vmul.f32 %v3298_v29, %v4053_v44  ;;  %3331 = vtanh.f32 %v4313_v13 }
 0x18d   :  { %v3302_v1 = vpop.eup %3301  ;;  %v1422_v3 = vmul.f32 %v4514_v15, %v3300_v39  ;;  %3333 = vtanh.f32 %v4381_v61 }
 0x18e   :  { %1640 = vadd.xlane.f32.xlu1 %v1418_v25  ;;  %v3304_v22 = vpop.eup %3303  ;;  %v1352_v42 = vmul.f32 %v4514_v15, %v3302_v1  ;;  %3335 = vtanh.f32 %v4317_v26 }
 0x18f   :  { %1500 = vadd.xlane.f32.xlu0 %v1348_v38  ;;  %v3306_v44 = vpop.eup %3305  ;;  %v1353_v40 = vmul.f32 %v4514_v15, %v3304_v22  ;;  %3337 = vtanh.f32 %v4389_v19 }
 0x190   :  { %v3308_v25 = vpop.eup %3307  ;;  %v1354_v51 = vmul.f32 %v4514_v15, %v3306_v44  ;;  %3339 = vtanh.f32 %v4321_v43 }
 0x191   :  { %v3310_v38 = vpop.eup %3309  ;;  %v1425_v41 = vmul.f32 %v4514_v15, %v3308_v25  ;;  %3341 = vtanh.f32 %v4405_v63 }
 0x192   :  { %1502 = vadd.xlane.f32.xlu1 %v1349_v45  ;;  %v3312_v45 = vpop.eup %3311  ;;  %v1356_v28 = vmul.f32 %v4514_v15, %v3310_v38  ;;  %3343 = vtanh.f32 %v4329_v14 }
 0x193   :  { %1646 = vadd.xlane.f32.xlu0 %v1421_v9  ;;  %v3314_v9 = vpop.eup %3313  ;;  %v1424_v20 = vmul.f32 %v4514_v15, %v3312_v45  ;;  %3345 = vtanh.f32 %v4421_v56 }
 0x194   :  { %v1358_v29 = vmul.f32 %v4514_v15, %v3314_v9 }
 0x196   :  { %1644 = vadd.xlane.f32.xlu1 %v1420_v53  ;;  %v4539_v53 = vand.u32 127, %v5151_v52 }
 0x197   :  { %1504 = vadd.xlane.f32.xlu0 %v1350_v37  ;;  %v3316_v37 = vpop.eup %3315  ;;  %3347 = vtanh.f32 %v4333_v31 }
 0x198   :  { %v1980_v39 = vadd.s32 4294967288, %v4539_v53  ;;  %v1994_v44 = vadd.s32 4294967272, %v4539_v53  ;;  %v4561_v54 = vsub.s32 %v4539_v53, %v4005_v58  ;;  %v2008_v61 = vadd.s32 4294967256, %v4539_v53 }
 0x199   :  { %v2022_v19 = vadd.s32 4294967240, %v4539_v53 }
 0x19a   :  { %1506 = vadd.xlane.f32.xlu1 %v1351_v7  ;;  %v3318_v7 = vpop.eup %3317  ;;  %v4571_v52 = vsub.s32 %v1994_v44, %v4005_v58 }
 0x19b   :  { %1650 = vadd.xlane.f32.xlu0 %v1423_v12  ;;  %v1355_v12 = vmul.f32 %v4514_v15, %v3316_v37  ;;  %v3320_v1 = vpop.eup %3319  ;;  %v4606_v63 = vsub.s32 %v2022_v19, %v4005_v58 }
 0x19c   :  { %v3322_v22 = vpop.eup %3321  ;;  %v1427_v38 = vmul.f32 %v4514_v15, %v3320_v1 }
 0x19d   :  { %v1433_v13 = vmul.f32 %v4514_v15, %v3322_v22 }
 0x19e   :  { %1648 = vadd.xlane.f32.xlu1 %v1422_v3  ;;  %v1360_v3 = vmul.f32 %v4514_v15, %v3318_v7  ;;  %v2001_v7 = vadd.s32 4294967264, %v4539_v53 }
 0x19f   :  { %1508 = vadd.xlane.f32.xlu0 %v1352_v42  ;;  %v4519_v46 = vpop.xlane.xlu1 %1566  ;;  %v4555_v42 = vsub.s32 %v1980_v39, %v4005_v58 }
 0x1a0   :  { %v4522_v30 = vpop.xlane.xlu0 %1564 }
 0x1a2   :  { %1510 = vadd.xlane.f32.xlu1 %v1353_v40  ;;  %v1987_v40 = vadd.s32 4294967280, %v4539_v53 }
 0x1a3   :  { %1512 = vadd.xlane.f32.xlu0 %v1354_v51  ;;  %v4527_v50 = vpop.xlane.xlu1 %1570 }
 0x1a4   :  { %v4530_v27 = vpop.xlane.xlu0 %1568 }
 0x1a6   :  { %1654 = vadd.xlane.f32.xlu1 %v1425_v41  ;;  %v3324_v41 = vpop.eup %3323 }
 0x1a7   :  { %1516 = vadd.xlane.f32.xlu0 %v1356_v28  ;;  %v4535_v4 = vpop.xlane.xlu1 %1574  ;;  %v3326_v28 = vpop.eup %3325  ;;  %v1426_v1 = vmul.f32 %v4514_v15, %v3324_v41  ;;  %v4594_v41 = vsub.s32 %v2001_v7, %v4005_v58 }
 0x1a8   :  { %v4541_v48 = vpop.xlane.xlu0 %1572  ;;  %v1362_v44 = vmul.f32 %v4514_v15, %v3326_v28 }
 0x1aa   :  { %1652 = vadd.xlane.f32.xlu1 %v1424_v20 }
 0x1ab   :  { %1520 = vadd.xlane.f32.xlu0 %v1358_v29  ;;  %v4547_v8 = vpop.xlane.xlu1 %1578  ;;  %v4577_v29 = vsub.s32 %v1987_v40, %v4005_v58 }
 0x1ac   :  { %v4550_v33 = vpop.xlane.xlu0 %1576 }
 0x1ae   :  { %1514 = vadd.xlane.f32.xlu1 %v1355_v12 }
 0x1af   :  { %1524 = vadd.xlane.f32.xlu0 %v1360_v3  ;;  %v1583_v17 = vpop.xlane.xlu1 %1582  ;;  %v3328_v3 = vpop.eup %3327 }
 0x1b0   :  { %v1783_v25 = vadd.f32 %v4507_v34, %v1583_v17  ;;  %v1581_v51 = vpop.xlane.xlu0 %1580  ;;  %v3330_v17 = vpop.eup %3329 }
 0x1b1   :  { %v1782_v45 = vadd.f32 %v4507_v34, %v1581_v51 }
 0x1b2   :  { %v2329_v9 = vrot.slane %v1783_v25, %v4555_v42  ;;  %1658 = vadd.xlane.f32.xlu1 %v1427_v38  ;;  %v4588_v25 = vsub.s32 %v2008_v61, %v4005_v58  ;;  %v3332_v61 = vpop.eup %3331 }
 0x1b3   :  { %v2325_v20 = vrot.slane %v1782_v45, %v4561_v54  ;;  %1670 = vadd.xlane.f32.xlu0 %v1433_v13  ;;  %v1587_v37 = vpop.xlane.xlu1 %1586  ;;  %v2015_v45 = vadd.s32 4294967248, %v4539_v53 }
 0x1b4   :  { %v1785_v39 = vadd.f32 %v4507_v34, %v1587_v37  ;;  %v1585_v12 = vpop.xlane.xlu0 %1584  ;;  %v1364_v37 = vmul.f32 %v4514_v15, %v3330_v17 }
 0x1b5   :  { %v2330_v22 = vsel %vm1985_vm1, %v2329_v9, %v2325_v20  ;;  %v1784_v26 = vadd.f32 %v4507_v34, %v1585_v12  ;;  %v1357_v9 = vmul.f32 %v4514_v15, %v3328_v3 }
 0x1b6   :  { %v2339_v40 = vrot.slane %v1785_v39, %v4571_v52  ;;  %1656 = vadd.xlane.f32.xlu1 %v1426_v1  ;;  %v3334_v39 = vpop.eup %3333 }
 0x1b7   :  { %v2334_v51 = vrot.slane %v1784_v26, %v4577_v29  ;;  %1528 = vadd.xlane.f32.xlu0 %v1362_v44  ;;  %v1591_v38 = vpop.xlane.xlu1 %1590  ;;  %v1109_v26 = vadd.f32 %v4025_v21, %v4434_v18  ;;  %v3336_v19 = vpop.eup %3335 }
 0x1b8   :  { %v1787_v13 = vadd.f32 %v4507_v34, %v1591_v38  ;;  %v1589_v28 = vpop.xlane.xlu0 %1588  ;;  %v1436_v38 = vmul.f32 %v4514_v15, %v3334_v39  ;;  %v2036_v39 = vadd.s32 4294967224, %v4539_v53 }
 0x1b9   :  { %v2335_v20 = vsel %vm1992_vm2, %v2334_v51, %v2330_v22  ;;  %v1786_v43 = vadd.f32 %v4507_v34, %v1589_v28  ;;  %v4611_v22 = vsub.s32 %v2015_v45, %v4005_v58  ;;  %3349 = vtanh.f32 %v1109_v26 }
 0x1ba   :  { %v2349_v7 = vrot.slane %v1787_v13, %v4588_v25  ;;  %v2340_v12 = vsel %vm1999_vm3, %v2339_v40, %v2335_v20  ;;  %1518 = vadd.xlane.f32.xlu1 %v1357_v9  ;;  %v1429_v40 = vmul.f32 %v4514_v15, %v3332_v61  ;;  %v3338_v13 = vpop.eup %3337  ;;  %v1428_v61 = vmul.f32 %v4514_v15, %v3336_v19 }
 0x1bb   :  { %v2344_v1 = vrot.slane %v1786_v43, %v4594_v41  ;;  %1532 = vadd.xlane.f32.xlu0 %v1364_v37  ;;  %v1595_v3 = vpop.xlane.xlu1 %1594  ;;  %v3340_v20 = vpop.eup %3339  ;;  %v1366_v31 = vmul.f32 %v4514_v15, %v3338_v13  ;;  %3351 = vtanh.f32 %v4337_v49  ;;  %v4643_v13 = vsub.s32 %v2036_v39, %v4005_v58 }
 0x1bc   :  { %v1789_v44 = vadd.f32 %v4507_v34, %v1595_v3  ;;  %v1593_v17 = vpop.xlane.xlu0 %1592  ;;  %v3342_v37 = vpop.eup %3341  ;;  %3353 = vtanh.f32 %v4443_v36 }
 0x1bd   :  { %v2345_v14 = vsel %vm2006_vm4, %v2344_v1, %v2340_v12  ;;  %v1788_v51 = vadd.f32 %v4507_v34, %v1593_v17  ;;  %v2050_v12 = vadd.s32 4294967208, %v4539_v53  ;;  %v3344_v19 = vpop.eup %3343  ;;  %3355 = vtanh.f32 %v4349_v47 }
 0x1be   :  { %v2359_v56 = vrot.slane %v1789_v44, %v4606_v63  ;;  %v2350_v18 = vsel %vm2013_vm5, %v2349_v7, %v2345_v14  ;;  %1662 = vadd.xlane.f32.xlu1 %v1429_v40  ;;  %v2029_v7 = vadd.s32 4294967232, %v4539_v53  ;;  %v1111_v44 = vadd.f32 %v4025_v21, %v4448_v57  ;;  %v3346_v49 = vpop.eup %3345 }
 0x1bf   :  { %v2354_v45 = vrot.slane %v1788_v51, %v4611_v22  ;;  %1676 = vadd.xlane.f32.xlu0 %v1436_v38  ;;  %v1599_v28 = vpop.xlane.xlu1 %1598  ;;  %v1359_v40 = vmul.f32 %v4514_v15, %v3340_v20  ;;  %v2043_v14 = vadd.s32 4294967216, %v4539_v53  ;;  %v1368_v38 = vmul.f32 %v4514_v15, %v3342_v37 }
 0x1c0   :  { %v1455_v9 = vpop.xlane.xlu0 %1454  ;;  %v4646_v36 = vsub.s32 %v2029_v7, %v4005_v58  ;;  %v4649_v57 = vsub.s32 %v2050_v12, %v4005_v58  ;;  %3357 = vtanh.f32 %v1111_v44  ;;  %v1791_v20 = vadd.f32 %v4507_v34, %v1599_v28 }
 0x1c1   :  { %v2355_v43 = vsel %vm2020_vm6, %v2354_v45, %v2350_v18  ;;  %v1719_v3 = vadd.f32 %v4507_v34, %v1455_v9  ;;  %v1431_v37 = vmul.f32 %v4514_v15, %v3344_v19  ;;  %v4660_v39 = vsub.s32 %v2043_v14, %v4005_v58 }
 0x1c2   :  { %1660 = vadd.xlane.f32.xlu1 %v1428_v61  ;;  %v2360_v1 = vsel %vm2027_vm7, %v2359_v56, %v2355_v43  ;;  %v1113_v56 = vadd.f32 %v4025_v21, %v4462_v0  ;;  %v3348_v61 = vpop.eup %3347  ;;  %v1370_v12 = vmul.f32 %v4514_v15, %v3346_v49  ;;  %3359 = vtanh.f32 %v4353_v62 }
 0x1c3   :  { %1536 = vadd.xlane.f32.xlu0 %v1366_v31  ;;  %v1459_v26 = vpop.xlane.xlu1 %1458  ;;  %v1984_v18 = vrot.slane %v1719_v3, %v4555_v42  ;;  %v3350_v3 = vpop.eup %3349  ;;  %v1115_v19 = vadd.f32 %v4025_v21, %v4476_v24  ;;  %v2369_v14 = vrot.slane %v1791_v20, %v4643_v13 }
 0x1c4   :  { %v1453_v17 = vpop.xlane.xlu0 %1452  ;;  %v1721_v9 = vadd.f32 %v4507_v34, %v1459_v26  ;;  %3361 = vtanh.f32 %v1113_v56 }
 0x1c5   :  { %v1718_v51 = vadd.f32 %v4507_v34, %v1453_v17  ;;  %v3352_v49 = vpop.eup %3351  ;;  %3363 = vtanh.f32 %v4369_v2 }
 0x1c6   :  { %1522 = vadd.xlane.f32.xlu1 %v1359_v40  ;;  %v1998_v26 = vrot.slane %v1721_v9, %v4571_v52  ;;  %v1430_v40 = vmul.f32 %v4514_v15, %v3348_v61  ;;  %3365 = vtanh.f32 %v1115_v19 }
 0x1c7   :  { %v1979_v45 = vrot.slane %v1718_v51, %v4561_v54  ;;  %1540 = vadd.xlane.f32.xlu0 %v1368_v38  ;;  %v1457_v47 = vpop.xlane.xlu1 %1456  ;;  %3367 = vtanh.f32 %v4377_v23 }
 0x1c8   :  { %v1597_v43 = vpop.xlane.xlu0 %1596  ;;  %v1720_v31 = vadd.f32 %v4507_v34, %v1457_v47  ;;  %v3354_v47 = vpop.eup %3353  ;;  %3369 = vtanh.f32 %v4233_v32 }
 0x1c9   :  { %v1986_v0 = vsel %vm1985_vm1, %v1984_v18, %v1979_v45  ;;  %v1790_v7 = vadd.f32 %v4507_v34, %v1597_v43  ;;  %v1372_v45 = vmul.f32 %v4514_v15, %v3350_v3  ;;  %v3356_v43 = vpop.eup %3355  ;;  %3371 = vtanh.f32 %v4385_v11 }
 0x1ca   :  { %v1991_v28 = vrot.slane %v1720_v31, %v4577_v29  ;;  %1666 = vadd.xlane.f32.xlu1 %v1431_v37  ;;  %v2064_v31 = vadd.s32 4294967192, %v4539_v53  ;;  %3373 = vtanh.f32 %v4467_v6 }
 0x1cb   :  { %v2364_v44 = vrot.slane %v1790_v7, %v4646_v36  ;;  %1544 = vadd.xlane.f32.xlu0 %v1370_v12  ;;  %v1603_v17 = vpop.xlane.xlu1 %1602  ;;  %v1361_v7 = vmul.f32 %v4514_v15, %v3352_v49  ;;  %v2057_v12 = vadd.s32 4294967200, %v4539_v53  ;;  %v1432_v49 = vmul.f32 %v4514_v15, %v3356_v43 }
 0x1cc   :  { %v1993_v62 = vsel %vm1992_vm2, %v1991_v28, %v1986_v0  ;;  %v1601_v51 = vpop.xlane.xlu0 %1600  ;;  %v1793_v38 = vadd.f32 %v4507_v34, %v1603_v17  ;;  %v1444_v28 = vmul.f32 %v4514_v15, %v3354_v47 }
 0x1cd   :  { %v2365_v56 = vsel %vm2034_vm8, %v2364_v44, %v2360_v1  ;;  %v1792_v18 = vadd.f32 %v4507_v34, %v1601_v51  ;;  %v2000_v9 = vsel %vm1999_vm3, %v1998_v26, %v1993_v62  ;;  %v3358_v26 = vpop.eup %3357  ;;  %v4696_v62 = vsub.s32 %v2064_v31, %v4005_v58 }
 0x1ce   :  { %v2370_v24 = vsel %vm2041_vm9, %v2369_v14, %v2365_v56  ;;  %v2379_v61 = vrot.slane %v1793_v38, %v4649_v57  ;;  %1664 = vadd.xlane.f32.xlu1 %v1430_v40  ;;  %v3360_v14 = vpop.eup %3359  ;;  %v1374_v47 = vmul.f32 %v4514_v15, %v3358_v26 }
 0x1cf   :  { %v2374_v20 = vrot.slane %v1792_v18, %v4660_v39  ;;  %1548 = vadd.xlane.f32.xlu0 %v1372_v45  ;;  %v1463_v1 = vpop.xlane.xlu1 %1462  ;;  %v3362_v56 = vpop.eup %3361  ;;  %v4701_v18 = vsub.s32 %v2057_v12, %v4005_v58  ;;  %v1363_v31 = vmul.f32 %v4514_v15, %v3360_v14 }
 0x1d0   :  { %v1723_v37 = vadd.f32 %v4507_v34, %v1463_v1  ;;  %v1461_v0 = vpop.xlane.xlu0 %1460  ;;  %v1376_v12 = vmul.f32 %v4514_v15, %v3362_v56 }
 0x1d1   :  { %v2375_v3 = vsel %vm2048_vm10, %v2374_v20, %v2370_v24  ;;  %v1722_v2 = vadd.f32 %v4507_v34, %v1461_v0  ;;  %v2071_v0 = vadd.s32 4294967184, %v4539_v53 }
 0x1d2   :  { %v2380_v44 = vsel %vm2055_vm11, %v2379_v61, %v2375_v3  ;;  %v2012_v17 = vrot.slane %v1723_v37, %v4588_v25  ;;  %1526 = vadd.xlane.f32.xlu1 %v1361_v7  ;;  %v3364_v37 = vpop.eup %3363 }
 0x1d3   :  { %v2005_v40 = vrot.slane %v1722_v2, %v4594_v41  ;;  %1692 = vadd.xlane.f32.xlu0 %v1444_v28  ;;  %v1607_v19 = vpop.xlane.xlu1 %1606  ;;  %v3366_v3 = vpop.eup %3365  ;;  %v5152_v28 = vld [vmem:[#allocation5_spill] sm:$0xff] }
 0x1d4   :  { %v1795_v51 = vadd.f32 %v4507_v34, %v1607_v19  ;;  %v1605_v38 = vpop.xlane.xlu0 %1604  ;;  %3375 = vtanh.f32 %v5152_v28  ;;  %v1365_v19 = vmul.f32 %v4514_v15, %v3364_v37  ;;  %v3368_v14 = vpop.eup %3367  ;;  %v1378_v56 = vmul.f32 %v4514_v15, %v3366_v3 }
 0x1d5   :  { %v2007_v23 = vsel %vm2006_vm4, %v2005_v40, %v2000_v9  ;;  %v1794_v45 = vadd.f32 %v4507_v34, %v1605_v38  ;;  %v2078_v9 = vadd.s32 4294967176, %v4539_v53  ;;  %3377 = vtanh.f32 %v4485_v10 }
 0x1d6   :  { %v2389_v32 = vrot.slane %v1795_v51, %v4696_v62  ;;  %1668 = vadd.xlane.f32.xlu1 %v1432_v49  ;;  %v2014_v24 = vsel %vm2013_vm5, %v2012_v17, %v2007_v23  ;;  %v4729_v51 = vsub.s32 %v2071_v0, %v4005_v58  ;;  %v3370_v23 = vpop.eup %3369  ;;  %3379 = vtanh.f32 %v4397_v35  ;;  %v5153_v0 = vld [vmem:[#allocation6_spill] sm:$0xff] }
 0x1d7   :  { %v2384_v61 = vrot.slane %v1794_v45, %v4701_v18  ;;  %1552 = vadd.xlane.f32.xlu0 %v1374_v47  ;;  %v1467_v20 = vpop.xlane.xlu1 %1466  ;;  %v4724_v53 = vsub.s32 %v2078_v9, %v4005_v58  ;;  %3381 = vtanh.f32 %v5153_v0 }
 0x1d8   :  { %v1725_v1 = vadd.f32 %v4507_v34, %v1467_v20  ;;  %v1465_v43 = vpop.xlane.xlu0 %1464  ;;  %v3372_v20 = vpop.eup %3371 }
 0x1d9   :  { %v2385_v7 = vsel %vm2062_vm12, %v2384_v61, %v2380_v44  ;;  %v1724_v11 = vadd.f32 %v4507_v34, %v1465_v43  ;;  %v1437_v61 = vmul.f32 %v4514_v15, %v3368_v14  ;;  %v1419_v43 = vmul.f32 %v4514_v15, %v3370_v23  ;;  %v5154_v14 = vld [vmem:[#allocation7_spill] sm:$0xff] }
 0x1da   :  { %v2026_v2 = vrot.slane %v1725_v1, %v4606_v63  ;;  %1530 = vadd.xlane.f32.xlu1 %v1363_v31  ;;  %v2390_v6 = vsel %vm2069_vm13, %v2389_v32, %v2385_v7  ;;  %v3374_v31 = vpop.eup %3373  ;;  %3383 = vtanh.f32 %v5154_v14 }
 0x1db   :  { %v2019_v26 = vrot.slane %v1724_v11, %v4611_v22  ;;  %1556 = vadd.xlane.f32.xlu0 %v1376_v12  ;;  %v1611_v17 = vpop.xlane.xlu1 %1610  ;;  %3385 = vtanh.f32 %v4413_v55  ;;  %v5155_v55 = vld [vmem:[#allocation8_spill] sm:$0xff] }
 0x1dc   :  { %v1797_v44 = vadd.f32 %v4507_v34, %v1611_v17  ;;  %v1609_v40 = vpop.xlane.xlu0 %1608  ;;  %v1449_v17 = vmul.f32 %v4514_v15, %v3374_v31  ;;  %3387 = vtanh.f32 %v5155_v55 }
 0x1dd   :  { %v2021_v38 = vsel %vm2020_vm6, %v2019_v26, %v2014_v24  ;;  %v1796_v49 = vadd.f32 %v4507_v34, %v1609_v40  ;;  %3389 = vtanh.f32 %v4425_v5  ;;  %v5156_v5 = vld [vmem:[#allocation9_spill] sm:$0xff] }
 0x1de   :  { %v2399_v10 = vrot.slane %v1797_v44, %v4724_v53  ;;  %1534 = vadd.xlane.f32.xlu1 %v1365_v19  ;;  %v2028_v45 = vsel %vm2027_vm7, %v2026_v2, %v2021_v38  ;;  %v1367_v2 = vmul.f32 %v4514_v15, %v3372_v20  ;;  %3391 = vtanh.f32 %v4429_v16 }
 0x1df   :  { %v2394_v47 = vrot.slane %v1796_v49, %v4729_v51  ;;  %1560 = vadd.xlane.f32.xlu0 %v1378_v56  ;;  %v1471_v58 = vpop.xlane.xlu1 %1470 }
 0x1e0   :  { %v1727_v32 = vadd.f32 %v4507_v34, %v1471_v58  ;;  %v1469_v24 = vpop.xlane.xlu0 %1468 }
 0x1e1   :  { %v2395_v9 = vsel %vm2076_vm14, %v2394_v47, %v2390_v6  ;;  %v1726_v1 = vadd.f32 %v4507_v34, %v1469_v24  ;;  %v3376_v6 = vpop.eup %3375 }
 0x1e2   :  { %v4744_v35 = vsel %vm2083_vm15, %v2399_v10, %v2395_v9  ;;  %v2040_v37 = vrot.slane %v1727_v32, %v4643_v13  ;;  %1678 = vadd.xlane.f32.xlu1 %v1437_v61  ;;  %v3378_v44 = vpop.eup %3377  ;;  %v1439_v10 = vmul.f32 %v4514_v15, %v3376_v6 }
 0x1e3   :  { %v2033_v7 = vrot.slane %v1726_v1, %v4646_v36  ;;  %1642 = vadd.xlane.f32.xlu0 %v1419_v43  ;;  %v1615_v11 = vpop.xlane.xlu1 %1614  ;;  %v1450_v32 = vmul.f32 %v4514_v15, %v3378_v44 }
 0x1e4   :  { %v1799_v12 = vadd.f32 %v4507_v34, %v1615_v11  ;;  %v1613_v3 = vpop.xlane.xlu0 %1612 }
 0x1e5   :  { %v2035_v28 = vsel %vm2034_vm8, %v2033_v7, %v2028_v45  ;;  %v1798_v26 = vadd.f32 %v4507_v34, %v1613_v3  ;;  %v3380_v45 = vpop.eup %3379 }
 0x1e6   :  { %v2408_v40 = vrot.slane %v1799_v12, %v4555_v42  ;;  %1538 = vadd.xlane.f32.xlu1 %v1367_v2  ;;  %v2042_v19 = vsel %vm2041_vm9, %v2040_v37, %v2035_v28  ;;  %v1438_v43 = vmul.f32 %v4514_v15, %v3380_v45  ;;  %v3382_v31 = vpop.eup %3381 }
 0x1e7   :  { %v2404_v38 = vrot.slane %v1798_v26, %v4561_v54  ;;  %1702 = vadd.xlane.f32.xlu0 %v1449_v17  ;;  %v1475_v49 = vpop.xlane.xlu1 %1474  ;;  %v1369_v28 = vmul.f32 %v4514_v15, %v3382_v31  ;;  %v3384_v26 = vpop.eup %3383 }
 0x1e8   :  { %v1729_v56 = vadd.f32 %v4507_v34, %v1475_v49  ;;  %v1473_v23 = vpop.xlane.xlu0 %1472 }
 0x1e9   :  { %v2409_v47 = vsel %vm1985_vm1, %v2408_v40, %v2404_v38  ;;  %v1728_v58 = vadd.f32 %v4507_v34, %v1473_v23  ;;  %v1441_v23 = vmul.f32 %v4514_v15, %v3384_v26 }
 0x1ea   :  { %v2054_v24 = vrot.slane %v1729_v56, %v4649_v57  ;;  %1682 = vadd.xlane.f32.xlu1 %v1439_v10  ;;  %v3386_v10 = vpop.eup %3385 }
 0x1eb   :  { %v2047_v61 = vrot.slane %v1728_v58, %v4660_v39  ;;  %1704 = vadd.xlane.f32.xlu0 %v1450_v32  ;;  %v1619_v20 = vpop.xlane.xlu1 %1618  ;;  %v3388_v31 = vpop.eup %3387 }
 0x1ec   :  { %v1801_v9 = vadd.f32 %v4507_v34, %v1619_v20  ;;  %v1617_v1 = vpop.xlane.xlu0 %1616 }
 0x1ed   :  { %v2049_v37 = vsel %vm2048_vm10, %v2047_v61, %v2042_v19  ;;  %v1800_v0 = vadd.f32 %v4507_v34, %v1617_v1 }
 0x1ee   :  { %v2418_v7 = vrot.slane %v1801_v9, %v4571_v52  ;;  %1680 = vadd.xlane.f32.xlu1 %v1438_v43  ;;  %v2056_v11 = vsel %vm2055_vm11, %v2054_v24, %v2049_v37  ;;  %v1110_v24 = vadd.f32 %v5156_v5, %v4025_v21  ;;  %v1440_v43 = vmul.f32 %v4514_v15, %v3386_v10 }
 0x1ef   :  { %v2413_v12 = vrot.slane %v1800_v0, %v4577_v29  ;;  %v1479_v3 = vpop.xlane.xlu1 %1478 }
 0x1f0   :  { %v1731_v2 = vadd.f32 %v4507_v34, %v1479_v3  ;;  %v1477_v6 = vpop.xlane.xlu0 %1476  ;;  %3393 = vtanh.f32 %v1110_v24 }
 0x1f1   :  { %v2414_v17 = vsel %vm1992_vm2, %v2413_v12, %v2409_v47  ;;  %v1730_v44 = vadd.f32 %v4507_v34, %v1477_v6  ;;  %v3390_v6 = vpop.eup %3389 }
 0x1f2   :  { %v2068_v40 = vrot.slane %v1731_v2, %v4696_v62  ;;  %1542 = vadd.xlane.f32.xlu1 %v1369_v28  ;;  %v2419_v19 = vsel %vm1999_vm3, %v2418_v7, %v2414_v17  ;;  %v1371_v2 = vmul.f32 %v4514_v15, %v3388_v31  ;;  %v1443_v10 = vmul.f32 %v4514_v15, %v3390_v6 }
 0x1f3   :  { %v2061_v14 = vrot.slane %v1730_v44, %v4701_v18  ;;  %v1623_v38 = vpop.xlane.xlu1 %1622 }
 0x1f4   :  { %v1803_v49 = vadd.f32 %v4507_v34, %v1623_v38  ;;  %v1621_v56 = vpop.xlane.xlu0 %1620 }
 0x1f5   :  { %v2063_v45 = vsel %vm2062_vm12, %v2061_v14, %v2056_v11  ;;  %v1802_v47 = vadd.f32 %v4507_v34, %v1621_v56 }
 0x1f6   :  { %v2428_v58 = vrot.slane %v1803_v49, %v4588_v25  ;;  %1686 = vadd.xlane.f32.xlu1 %v1441_v23  ;;  %v2070_v32 = vsel %vm2069_vm13, %v2068_v40, %v2063_v45  ;;  %v5157_v40 = vld [vmem:[#allocation10_spill] sm:$0xff]  ;;  %v3392_v45 = vpop.eup %3391 }
 0x1f7   :  { %v2423_v61 = vrot.slane %v1802_v47, %v4594_v41  ;;  %v1483_v20 = vpop.xlane.xlu1 %1482  ;;  %3395 = vtanh.f32 %v5157_v40  ;;  %v5160_v40 = vld [vmem:[#allocation13_spill] sm:$0xff] }
 0x1f8   :  { %v1733_v9 = vadd.f32 %v4507_v34, %v1483_v20  ;;  %v1481_v1 = vpop.xlane.xlu0 %1480 }
 0x1f9   :  { %v2424_v37 = vsel %vm2006_vm4, %v2423_v61, %v2419_v19  ;;  %v1732_v0 = vadd.f32 %v4507_v34, %v1481_v1  ;;  %v5158_v19 = vld [vmem:[#allocation11_spill] sm:$0xff]  ;;  %v1442_v1 = vmul.f32 %v4514_v15, %v3392_v45 }
 0x1fa   :  { %v2082_v7 = vrot.slane %v1733_v9, %v4724_v53  ;;  %1684 = vadd.xlane.f32.xlu1 %v1440_v43  ;;  %v2429_v16 = vsel %vm2013_vm5, %v2428_v58, %v2424_v37  ;;  %v1112_v14 = vadd.f32 %v5158_v19, %v4025_v21  ;;  %v3394_v43 = vpop.eup %3393  ;;  %v5161_v19 = vld [vmem:[#allocation14_spill] sm:$0xff] }
 0x1fb   :  { %v2075_v11 = vrot.slane %v1732_v0, %v4729_v51  ;;  %v1627_v55 = vpop.xlane.xlu1 %1626 }
 0x1fc   :  { %v1805_v12 = vadd.f32 %v4507_v34, %v1627_v55  ;;  %v1625_v3 = vpop.xlane.xlu0 %1624  ;;  %3397 = vtanh.f32 %v1112_v14  ;;  %v1114_v14 = vadd.f32 %v5161_v19, %v4025_v21 }
 0x1fd   :  { %v2077_v28 = vsel %vm2076_vm14, %v2075_v11, %v2070_v32  ;;  %v1804_v26 = vadd.f32 %v4507_v34, %v1625_v3  ;;  %v1373_v3 = vmul.f32 %v4514_v15, %v3394_v43 }
 0x1fe   :  { %v4804_v17 = vsel %vm2083_vm15, %v2082_v7, %v2077_v28  ;;  %v2438_v44 = vrot.slane %v1805_v12, %v4606_v63  ;;  %1546 = vadd.xlane.f32.xlu1 %v1371_v2  ;;  %v5159_v7 = vld [vmem:[#allocation12_spill] sm:$0xff] }
 0x1ff   :  { %v2433_v38 = vrot.slane %v1804_v26, %v4611_v22  ;;  %v1487_v49 = vpop.xlane.xlu1 %1486  ;;  %3399 = vtanh.f32 %v5159_v7 }
 0x200   :  { %v1735_v56 = vadd.f32 %v4507_v34, %v1487_v49  ;;  %v1485_v23 = vpop.xlane.xlu0 %1484  ;;  %3401 = vtanh.f32 %v5160_v40 }
 0x201   :  { %v2434_v47 = vsel %vm2020_vm6, %v2433_v38, %v2429_v16  ;;  %v1734_v58 = vadd.f32 %v4507_v34, %v1485_v23  ;;  %v3396_v2 = vpop.eup %3395  ;;  %3403 = vtanh.f32 %v1114_v14 }
 0x202   :  { %v2092_v32 = vrot.slane %v1735_v56, %v4555_v42  ;;  %1690 = vadd.xlane.f32.xlu1 %v1443_v10  ;;  %v2439_v5 = vsel %vm2027_vm7, %v2438_v44, %v2434_v47  ;;  %v1445_v10 = vmul.f32 %v4514_v15, %v3396_v2  ;;  %3405 = vtanh.f32 %v4471_v60 }
 0x203   :  { %v2088_v24 = vrot.slane %v1734_v58, %v4561_v54  ;;  %v1631_v61 = vpop.xlane.xlu1 %1630 }
 0x204   :  { %v1807_v20 = vadd.f32 %v4507_v34, %v1631_v61  ;;  %v1629_v9 = vpop.xlane.xlu0 %1628 }
 0x205   :  { %v2093_v31 = vsel %vm1985_vm1, %v2092_v32, %v2088_v24  ;;  %v1806_v37 = vadd.f32 %v4507_v34, %v1629_v9 }
 0x206   :  { %v2448_v0 = vrot.slane %v1807_v20, %v4643_v13  ;;  %1688 = vadd.xlane.f32.xlu1 %v1442_v1  ;;  %v3398_v45 = vpop.eup %3397 }
 0x207   :  { %v2443_v16 = vrot.slane %v1806_v37, %v4646_v36  ;;  %v1491_v11 = vpop.xlane.xlu1 %1490  ;;  %v1375_v1 = vmul.f32 %v4514_v15, %v3398_v45 }
 0x208   :  { %v1737_v55 = vadd.f32 %v4507_v34, %v1491_v11  ;;  %v1489_v12 = vpop.xlane.xlu0 %1488 }
 0x209   :  { %v2444_v6 = vsel %vm2034_vm8, %v2443_v16, %v2439_v5  ;;  %v1736_v28 = vadd.f32 %v4507_v34, %v1489_v12  ;;  %v3400_v43 = vpop.eup %3399  ;;  %v5162_v16 = vld [vmem:[#allocation15_spill] sm:$0xff] }
 0x20a   :  { %v2102_v26 = vrot.slane %v1737_v55, %v4571_v52  ;;  %1550 = vadd.xlane.f32.xlu1 %v1373_v3  ;;  %v2449_v44 = vsel %vm2041_vm9, %v2448_v0, %v2444_v6  ;;  %v1116_v11 = vadd.f32 %v5162_v16, %v4025_v21  ;;  %v1447_v6 = vmul.f32 %v4514_v15, %v3400_v43 }
 0x20b   :  { %v2097_v38 = vrot.slane %v1736_v28, %v4577_v29  ;;  %v1635_v49 = vpop.xlane.xlu1 %1634  ;;  %v3402_v28 = vpop.eup %3401 }
 0x20c   :  { %v1809_v56 = vadd.f32 %v4507_v34, %v1635_v49  ;;  %v1633_v23 = vpop.xlane.xlu0 %1632  ;;  %3407 = vtanh.f32 %v1116_v11  ;;  %v1446_v49 = vmul.f32 %v4514_v15, %v3402_v28 }
 0x20d   :  { %v2098_v47 = vsel %vm1992_vm2, %v2097_v38, %v2093_v31  ;;  %v1808_v58 = vadd.f32 %v4507_v34, %v1633_v23 }
 0x20e   :  { %v2458_v32 = vrot.slane %v1809_v56, %v4649_v57  ;;  %1694 = vadd.xlane.f32.xlu1 %v1445_v10  ;;  %v2103_v5 = vsel %vm1999_vm3, %v2102_v26, %v2098_v47  ;;  %v3404_v56 = vpop.eup %3403 }
 0x20f   :  { %v2453_v24 = vrot.slane %v1808_v58, %v4660_v39  ;;  %v1495_v61 = vpop.xlane.xlu1 %1494  ;;  %v5163_v58 = vld [vmem:[#allocation4_spill] sm:$0xff] }
 0x210   :  { %v1739_v20 = vadd.f32 %v4507_v34, %v1495_v61  ;;  %v1493_v9 = vpop.xlane.xlu0 %1492  ;;  %3409 = vtanh.f32 %v5163_v58 }
 0x211   :  { %v2454_v37 = vsel %vm2048_vm10, %v2453_v24, %v2449_v44  ;;  %v1738_v31 = vadd.f32 %v4507_v34, %v1493_v9  ;;  %v3406_v9 = vpop.eup %3405 }
 0x212   :  { %v2112_v0 = vrot.slane %v1739_v20, %v4588_v25  ;;  %1554 = vadd.xlane.f32.xlu1 %v1375_v1  ;;  %v2459_v7 = vsel %vm2055_vm11, %v2458_v32, %v2454_v37  ;;  %v1377_v20 = vmul.f32 %v4514_v15, %v3404_v56 }
 0x213   :  { %v2107_v55 = vrot.slane %v1738_v31, %v4594_v41  ;;  %v1639_v12 = vpop.xlane.xlu1 %1638 }
 0x214   :  { %v1811_v3 = vadd.f32 %v4507_v34, %v1639_v12  ;;  %v1637_v2 = vpop.xlane.xlu0 %1636 }
 0x215   :  { %v2108_v26 = vsel %vm2006_vm4, %v2107_v55, %v2103_v5  ;;  %v1810_v44 = vadd.f32 %v4507_v34, %v1637_v2 }
 0x216   :  { %v2468_v40 = vrot.slane %v1811_v3, %v4696_v62  ;;  %1698 = vadd.xlane.f32.xlu1 %v1447_v6  ;;  %v2113_v60 = vsel %vm2013_vm5, %v2112_v0, %v2108_v26  ;;  %v5164_v0 = vld [vmem:[#allocation3_spill] sm:$0xff]  ;;  %v1448_v3 = vmul.f32 %v4514_v15, %v3406_v9  ;;  %v3408_v2 = vpop.eup %3407 }
 0x217   :  { %v2463_v21 = vrot.slane %v1810_v44, %v4701_v18  ;;  %v1499_v19 = vpop.xlane.xlu1 %1498  ;;  %3411 = vtanh.f32 %v5164_v0 }
 0x218   :  { %v1741_v14 = vadd.f32 %v4507_v34, %v1499_v19  ;;  %v1497_v38 = vpop.xlane.xlu0 %1496  ;;  %3413 = vtanh.f32 %v4481_v59  ;;  %v1379_v19 = vmul.f32 %v4514_v15, %v3408_v2  ;;  %v3416_v15 = vld [vmem:[%s5135_s5] ss:$0 sm:$0xff] }
 0x219   :  { %v2464_v23 = vsel %vm2062_vm12, %v2463_v21, %v2459_v7  ;;  %v1740_v10 = vadd.f32 %v4507_v34, %v1497_v38 }
 0x21a   :  { %v2122_v45 = vrot.slane %v1741_v14, %v4606_v63  ;;  %1696 = vadd.xlane.f32.xlu1 %v1446_v49  ;;  %v2469_v47 = vsel %vm2069_vm13, %v2468_v40, %v2464_v23  ;;  %v3410_v14 = vpop.eup %3409 }
 0x21b   :  { %v2117_v32 = vrot.slane %v1740_v10, %v4611_v22  ;;  %v1641_v5 = vpop.xlane.xlu1 %1640  ;;  %v1434_v58 = vmul.f32 %v3416_v15, %v3410_v14 }
 0x21c   :  { %v1812_v24 = vadd.f32 %v4507_v34, %v1641_v5  ;;  %v1501_v61 = vpop.xlane.xlu0 %1500 }
 0x21d   :  { %v2118_v1 = vsel %vm2020_vm6, %v2117_v32, %v2113_v60  ;;  %v1742_v43 = vadd.f32 %v4507_v34, %v1501_v61 }
 0x21e   :  { %v2473_v37 = vrot.slane %v1812_v24, %v4729_v51  ;;  %v2123_v31 = vsel %vm2027_vm7, %v2122_v45, %v2118_v1  ;;  %1558 = vadd.xlane.f32.xlu1 %v1377_v20 }
 0x21f   :  { %v2127_v7 = vrot.slane %v1742_v43, %v4646_v36  ;;  %v1503_v16 = vpop.xlane.xlu1 %1502 }
 0x220   :  { %v4876_v11 = vsel %vm2076_vm14, %v2473_v37, %v2469_v47  ;;  %v1743_v55 = vadd.f32 %v4507_v34, %v1503_v16  ;;  %v1647_v12 = vpop.xlane.xlu0 %1646 }
 0x221   :  { %v2128_v6 = vsel %vm2034_vm8, %v2127_v7, %v2123_v31  ;;  %v1815_v26 = vadd.f32 %v4507_v34, %v1647_v12  ;;  %v3412_v32 = vpop.eup %3411 }
 0x222   :  { %v2132_v28 = vrot.slane %v1743_v55, %v4643_v13  ;;  %1700 = vadd.xlane.f32.xlu1 %v1448_v3  ;;  %v1435_v37 = vmul.f32 %v3416_v15, %v3412_v32  ;;  %v3414_v31 = vpop.eup %3413 }
 0x223   :  { %v1645_v44 = vpop.xlane.xlu1 %1644  ;;  %v2487_v49 = vrot.slane %v1815_v26, %v4555_v42 }
 0x224   :  { %v2133_v40 = vsel %vm2041_vm9, %v2132_v28, %v2128_v6  ;;  %v1814_v60 = vadd.f32 %v4507_v34, %v1645_v44  ;;  %v1505_v21 = vpop.xlane.xlu0 %1504  ;;  %v1451_v28 = vmul.f32 %v3416_v15, %v3414_v31 }
 0x225   :  { %v1744_v38 = vadd.f32 %v4507_v34, %v1505_v21 }
 0x226   :  { %v2483_v56 = vrot.slane %v1814_v60, %v4561_v54  ;;  %1562 = vadd.xlane.f32.xlu1 %v1379_v19 }
 0x227   :  { %v2137_v23 = vrot.slane %v1744_v38, %v4660_v39  ;;  %v1507_v10 = vpop.xlane.xlu1 %1506 }
 0x228   :  { %v2488_v59 = vsel %vm1985_vm1, %v2487_v49, %v2483_v56  ;;  %v1745_v45 = vadd.f32 %v4507_v34, %v1507_v10  ;;  %v1651_v47 = vpop.xlane.xlu0 %1650 }
 0x229   :  { %v2138_v5 = vsel %vm2048_vm10, %v2137_v23, %v2133_v40  ;;  %v1817_v61 = vadd.f32 %v4507_v34, %v1651_v47 }
 0x22a   :  { %v2142_v24 = vrot.slane %v1745_v45, %v4649_v57  ;;  %1672 = vadd.xlane.f32.xlu1 %v1434_v58 }
 0x22b   :  { %v1649_v20 = vpop.xlane.xlu1 %1648  ;;  %v2497_v16 = vrot.slane %v1817_v61, %v4571_v52 }
 0x22c   :  { %v2143_v9 = vsel %vm2055_vm11, %v2142_v24, %v2138_v5  ;;  %v1816_v1 = vadd.f32 %v4507_v34, %v1649_v20  ;;  %v1509_v43 = vpop.xlane.xlu0 %1508 }
 0x22d   :  { %v1746_v0 = vadd.f32 %v4507_v34, %v1509_v43 }
 0x22e   :  { %v2492_v7 = vrot.slane %v1816_v1, %v4577_v29  ;;  %1674 = vadd.xlane.f32.xlu1 %v1435_v37 }
 0x22f   :  { %v2147_v55 = vrot.slane %v1746_v0, %v4701_v18  ;;  %v1511_v12 = vpop.xlane.xlu1 %1510 }
 0x230   :  { %v2493_v3 = vsel %vm1992_vm2, %v2492_v7, %v2488_v59  ;;  %v1747_v2 = vadd.f32 %v4507_v34, %v1511_v12  ;;  %v1513_v6 = vpop.xlane.xlu0 %1512 }
 0x231   :  { %v2148_v26 = vsel %vm2062_vm12, %v2147_v55, %v2143_v9  ;;  %v1748_v44 = vadd.f32 %v4507_v34, %v1513_v6  ;;  %v2498_v40 = vsel %vm1999_vm3, %v2497_v16, %v2493_v3 }
 0x232   :  { %v2152_v60 = vrot.slane %v1747_v2, %v4696_v62  ;;  %1706 = vadd.xlane.f32.xlu1 %v1451_v28 }
 0x233   :  { %v2157_v21 = vrot.slane %v1748_v44, %v4729_v51  ;;  %v1655_v19 = vpop.xlane.xlu1 %1654 }
 0x234   :  { %v2153_v14 = vsel %vm2069_vm13, %v2152_v60, %v2148_v26  ;;  %v1819_v49 = vadd.f32 %v4507_v34, %v1655_v19  ;;  %v1517_v1 = vpop.xlane.xlu0 %1516 }
 0x235   :  { %v2158_v38 = vsel %vm2076_vm14, %v2157_v21, %v2153_v14  ;;  %v1750_v3 = vadd.f32 %v4507_v34, %v1517_v1 }
 0x236   :  { %v2507_v59 = vrot.slane %v1819_v49, %v4588_v25 }
 0x237   :  { %v1653_v56 = vpop.xlane.xlu1 %1652  ;;  %v2167_v60 = vrot.slane %v1750_v3, %v4561_v54 }
 0x238   :  { %v1818_v23 = vadd.f32 %v4507_v34, %v1653_v56  ;;  %v1521_v55 = vpop.xlane.xlu0 %1520 }
 0x23a   :  { %v2502_v10 = vrot.slane %v1818_v23, %v4594_v41 }
 0x23b   :  { %v1515_v45 = vpop.xlane.xlu1 %1514 }
 0x23c   :  { %v2503_v47 = vsel %vm2006_vm4, %v2502_v10, %v2498_v40  ;;  %v1749_v15 = vadd.f32 %v4507_v34, %v1515_v45  ;;  %v1525_v28 = vpop.xlane.xlu0 %1524  ;;  %v1752_v40 = vadd.f32 %v4507_v34, %v1521_v55 }
 0x23d   :  { %v2508_v58 = vsel %vm2013_vm5, %v2507_v59, %v2503_v47 }
 0x23e   :  { %v2162_v32 = vrot.slane %v1749_v15, %v4724_v53  ;;  %v2176_v23 = vrot.slane %v1752_v40, %v4577_v29 }
 0x23f   :  { %v1659_v5 = vpop.xlane.xlu1 %1658 }
 0x240   :  { %v2163_v24 = vsel %vm2083_vm15, %v2162_v32, %v2158_v38  ;;  %v1821_v20 = vadd.f32 %v4507_v34, %v1659_v5  ;;  %v4946_v59 = vpop.xlane.xlu0 %1670 }
 0x241   :  { %v4924_v61 = vsel %vm2638_vm0, %v2163_v24, %v4804_v17  ;;  %vm2640_vm0 = vcmask 1042434  }
 0x242   :  { %v2517_v31 = vrot.slane %v1821_v20, %v4606_v63 }
 0x243   :  { %v1657_v9 = vpop.xlane.xlu1 %1656 }
 0x244   :  { %v1820_v43 = vadd.f32 %v4507_v34, %v1657_v9  ;;  %v1529_v24 = vpop.xlane.xlu0 %1528  ;;  %v1754_v9 = vadd.f32 %v4507_v34, %v1525_v28 }
 0x245   :  { %v1756_v28 = vadd.f32 %v4507_v34, %v1529_v24 }
 0x246   :  { %v2512_v37 = vrot.slane %v1820_v43, %v4611_v22 }
 0x247   :  { %v1519_v0 = vpop.xlane.xlu1 %1518 }
 0x248   :  { %v2513_v7 = vsel %vm2020_vm6, %v2512_v37, %v2508_v58  ;;  %v1751_v17 = vadd.f32 %v4507_v34, %v1519_v0  ;;  %v1533_v55 = vpop.xlane.xlu0 %1532 }
 0x249   :  { %v2518_v16 = vsel %vm2027_vm7, %v2517_v31, %v2513_v7  ;;  %v2186_v7 = vrot.slane %v1754_v9, %v4594_v41 }
 0x24a   :  { %v2171_v26 = vrot.slane %v1751_v17, %v4555_v42 }
 0x24b   :  { %v1663_v12 = vpop.xlane.xlu1 %1662 }
 0x24c   :  { %v1823_v2 = vadd.f32 %v4507_v34, %v1663_v12  ;;  %v2172_v38 = vsel %vm1985_vm1, %v2171_v26, %v2167_v60  ;;  %v1677_v40 = vpop.xlane.xlu0 %1676 }
 0x24d   :  { %v2177_v47 = vsel %vm1992_vm2, %v2176_v23, %v2172_v38 }
 0x24e   :  { %v2527_v19 = vrot.slane %v1823_v2, %v4643_v13 }
 0x24f   :  { %v1661_v6 = vpop.xlane.xlu1 %1660 }
 0x250   :  { %v1822_v44 = vadd.f32 %v4507_v34, %v1661_v6 }
 0x252   :  { %v2522_v21 = vrot.slane %v1822_v44, %v4646_v36 }
 0x253   :  { %v1523_v14 = vpop.xlane.xlu1 %1522 }
 0x254   :  { %v2523_v49 = vsel %vm2034_vm8, %v2522_v21, %v2518_v16  ;;  %v1753_v56 = vadd.f32 %v4507_v34, %v1523_v14  ;;  %v1758_v14 = vadd.f32 %v4507_v34, %v1533_v55 }
 0x255   :  { %v2528_v10 = vsel %vm2041_vm9, %v2527_v19, %v2523_v49  ;;  %v2196_v19 = vrot.slane %v1756_v28, %v4611_v22 }
 0x256   :  { %v2181_v45 = vrot.slane %v1753_v56, %v4571_v52 }
 0x257   :  { %v1667_v15 = vpop.xlane.xlu1 %1666 }
 0x258   :  { %v2182_v58 = vsel %vm1999_vm3, %v2181_v45, %v2177_v47  ;;  %v1825_v32 = vadd.f32 %v4507_v34, %v1667_v15  ;;  %v2206_v45 = vrot.slane %v1758_v14, %v4646_v36  ;;  %v1537_v47 = vpop.xlane.xlu0 %1536 }
 0x259   :  { %v2187_v17 = vsel %vm2006_vm4, %v2186_v7, %v2182_v58  ;;  %v1760_v24 = vadd.f32 %v4507_v34, %v1537_v47 }
 0x25a   :  { %v2537_v43 = vrot.slane %v1825_v32, %v4649_v57 }
 0x25b   :  { %v1665_v5 = vpop.xlane.xlu1 %1664 }
 0x25c   :  { %v1824_v20 = vadd.f32 %v4507_v34, %v1665_v5  ;;  %v1541_v55 = vpop.xlane.xlu0 %1540 }
 0x25e   :  { %v2532_v1 = vrot.slane %v1824_v20, %v4660_v39 }
 0x25f   :  { %v1527_v37 = vpop.xlane.xlu1 %1526 }
 0x260   :  { %v2533_v31 = vsel %vm2048_vm10, %v2532_v1, %v2528_v10  ;;  %v1755_v0 = vadd.f32 %v4507_v34, %v1527_v37  ;;  %v2216_v1 = vrot.slane %v1760_v24, %v4660_v39 }
 0x261   :  { %v2538_v16 = vsel %vm2055_vm11, %v2537_v43, %v2533_v31 }
 0x262   :  { %v2191_v12 = vrot.slane %v1755_v0, %v4588_v25 }
 0x263   :  { %v1669_v3 = vpop.xlane.xlu1 %1668 }
 0x264   :  { %v2192_v2 = vsel %vm2013_vm5, %v2191_v12, %v2187_v17  ;;  %v1826_v6 = vadd.f32 %v4507_v34, %v1669_v3  ;;  %v1762_v3 = vadd.f32 %v4507_v34, %v1541_v55 }
 0x265   :  { %v2197_v49 = vsel %vm2020_vm6, %v2196_v19, %v2192_v2  ;;  %v1545_v2 = vpop.xlane.xlu0 %1544 }
 0x266   :  { %v2542_v26 = vrot.slane %v1826_v6, %v4701_v18 }
 0x267   :  { %v1531_v44 = vpop.xlane.xlu1 %1530 }
 0x268   :  { %v4967_v60 = vsel %vm2062_vm12, %v2542_v26, %v2538_v16  ;;  %v1757_v21 = vadd.f32 %v4507_v34, %v1531_v44  ;;  %v2226_v26 = vrot.slane %v1762_v3, %v4701_v18  ;;  %v1764_v44 = vadd.f32 %v4507_v34, %v1545_v2 }
 0x26a   :  { %v2201_v38 = vrot.slane %v1757_v21, %v4606_v63 }
 0x26b   :  { %v1535_v56 = vpop.xlane.xlu1 %1534 }
 0x26c   :  { %v2202_v23 = vsel %vm2027_vm7, %v2201_v38, %v2197_v49  ;;  %v1759_v10 = vadd.f32 %v4507_v34, %v1535_v56  ;;  %v2236_v49 = vrot.slane %v1764_v44, %v4729_v51 }
 0x26d   :  { %v2207_v58 = vsel %vm2034_vm8, %v2206_v45, %v2202_v23  ;;  %v1549_v45 = vpop.xlane.xlu0 %1548 }
 0x26e   :  { %v2211_v15 = vrot.slane %v1759_v10, %v4643_v13 }
 0x26f   :  { %v1679_v32 = vpop.xlane.xlu1 %1678 }
 0x270   :  { %v2212_v5 = vsel %vm2041_vm9, %v2211_v15, %v2207_v58 }
 0x271   :  { %v2217_v37 = vsel %vm2048_vm10, %v2216_v1, %v2212_v5  ;;  %v1693_v5 = vpop.xlane.xlu0 %1692 }
 0x273   :  { %v1539_v20 = vpop.xlane.xlu1 %1538 }
 0x274   :  { %v1761_v9 = vadd.f32 %v4507_v34, %v1539_v20 }
 0x276   :  { %v2221_v43 = vrot.slane %v1761_v9, %v4649_v57  ;;  %v1553_v9 = vpop.xlane.xlu0 %1552 }
 0x277   :  { %v1683_v31 = vpop.xlane.xlu1 %1682 }
 0x278   :  { %v2222_v0 = vsel %vm2055_vm11, %v2221_v43, %v2217_v37  ;;  %v1831_v43 = vadd.f32 %v4507_v34, %v1679_v32  ;;  %v1833_v32 = vadd.f32 %v4507_v34, %v1683_v31 }
 0x279   :  { %v2227_v21 = vsel %vm2062_vm12, %v2226_v26, %v2222_v0  ;;  %v1830_v0 = vadd.f32 %v4507_v34, %v1677_v40  ;;  %v1766_v26 = vadd.f32 %v4507_v34, %v1549_v45 }
 0x27a   :  { %v2576_v31 = vrot.slane %v1833_v32, %v4571_v52 }
 0x27b   :  { %v1681_v7 = vpop.xlane.xlu1 %1680 }
 0x27c   :  { %v1832_v37 = vadd.f32 %v4507_v34, %v1681_v7 }
 0x27e   :  { %v2571_v3 = vrot.slane %v1832_v37, %v4577_v29 }
 0x27f   :  { %v1543_v16 = vpop.xlane.xlu1 %1542 }
 0x280   :  { %v1763_v17 = vadd.f32 %v4507_v34, %v1543_v16  ;;  %v1557_v16 = vpop.xlane.xlu0 %1556 }
 0x282   :  { %v2231_v28 = vrot.slane %v1763_v17, %v4696_v62  ;;  %v2566_v17 = vrot.slane %v1831_v43, %v4555_v42  ;;  %v1770_v43 = vadd.f32 %v4507_v34, %v1557_v16 }
 0x283   :  { %v1687_v12 = vpop.xlane.xlu1 %1686 }
 0x284   :  { %v2232_v14 = vsel %vm2069_vm13, %v2231_v28, %v2227_v21  ;;  %v2562_v28 = vrot.slane %v1830_v0, %v4561_v54  ;;  %v1561_v44 = vpop.xlane.xlu0 %1560 }
 0x285   :  { %v2237_v23 = vsel %vm2076_vm14, %v2236_v49, %v2232_v14  ;;  %v1768_v14 = vadd.f32 %v4507_v34, %v1553_v9 }
 0x286   :  { %v2567_v40 = vsel %vm1985_vm1, %v2566_v17, %v2562_v28 }
 0x287   :  { %v1685_v6 = vpop.xlane.xlu1 %1684 }
 0x288   :  { %v1834_v2 = vadd.f32 %v4507_v34, %v1685_v6  ;;  %v1643_v37 = vpop.xlane.xlu0 %1642 }
 0x28a   :  { %v2581_v6 = vrot.slane %v1834_v2, %v4594_v41 }
 0x28b   :  { %v1547_v19 = vpop.xlane.xlu1 %1546 }
 0x28c   :  { %v1765_v38 = vadd.f32 %v4507_v34, %v1547_v19 }
 0x28e   :  { %v2241_v56 = vrot.slane %v1765_v38, %v4724_v53  ;;  %v2572_v38 = vsel %vm1992_vm2, %v2571_v3, %v2567_v40  ;;  %v1777_v40 = vadd.f32 %v4507_v34, %v4527_v50 }
 0x28f   :  { %v1691_v10 = vpop.xlane.xlu1 %1690 }
 0x290   :  { %v2242_v47 = vsel %vm2083_vm15, %v2241_v56, %v2237_v23  ;;  %v2246_v56 = vrot.slane %v1766_v26, %v4561_v54  ;;  %v1835_v23 = vadd.f32 %v4507_v34, %v1687_v12  ;;  %v1775_v12 = vadd.f32 %v4507_v34, %v4519_v46 }
 0x291   :  { %v4999_v15 = vsel %vm2640_vm0, %v2242_v47, %v4924_v61  ;;  %v2577_v47 = vsel %vm1999_vm3, %v2576_v31, %v2572_v38  ;;  %v1837_v17 = vadd.f32 %v4507_v34, %v1691_v10  ;;  %v2265_v26 = vrot.slane %v1770_v43, %v4594_v41 }
 0x292   :  { %v2586_v0 = vrot.slane %v1835_v23, %v4588_v25  ;;  %v1772_v10 = vadd.f32 %v4507_v34, %v1561_v44  ;;  %v1779_v41 = vadd.f32 %v4507_v34, %v4535_v4  ;;  %v1778_v44 = vadd.f32 %v4507_v34, %v4541_v48 }
 0x293   :  { %v1689_v58 = vpop.xlane.xlu1 %1688  ;;  %v2300_v31 = vrot.slane %v1777_v40, %v4649_v57 }
 0x294   :  { %v1836_v49 = vadd.f32 %v4507_v34, %v1689_v58  ;;  %v2582_v58 = vsel %vm2006_vm4, %v2581_v6, %v2577_v47  ;;  %v1781_v47 = vadd.f32 %v4507_v34, %v4547_v8 }
 0x295   :  { %v2587_v3 = vsel %vm2013_vm5, %v2586_v0, %v2582_v58 }
 0x296   :  { %v2591_v54 = vrot.slane %v1836_v49, %v4611_v22 }
 0x297   :  { %v1551_v24 = vpop.xlane.xlu1 %1550 }
 0x298   :  { %v1767_v61 = vadd.f32 %v4507_v34, %v1551_v24  ;;  %v2592_v32 = vsel %vm2020_vm6, %v2591_v54, %v2587_v3 }
 0x29a   :  { %v2250_v21 = vrot.slane %v1767_v61, %v4555_v42  ;;  %v1838_v61 = vadd.f32 %v4507_v34, %v1693_v5  ;;  %v2290_v5 = vrot.slane %v1775_v12, %v4643_v13 }
 0x29b   :  { %v1695_v20 = vpop.xlane.xlu1 %1694 }
 0x29c   :  { %v2251_v42 = vsel %vm1985_vm1, %v2250_v21, %v2246_v56  ;;  %v1839_v2 = vadd.f32 %v4507_v34, %v1695_v20  ;;  %v1776_v20 = vadd.f32 %v4507_v34, %v4530_v27  ;;  %v2596_v21 = vrot.slane %v1837_v17, %v4606_v63 }
 0x29d   :  { %v2601_v49 = vrot.slane %v1838_v61, %v4646_v36  ;;  %v2275_v56 = vrot.slane %v1772_v10, %v4611_v22  ;;  %vm2642_vm1 = vcmask 1043459  }
 0x29e   :  { %v2597_v38 = vsel %vm2027_vm7, %v2596_v21, %v2592_v32  ;;  %v2606_v50 = vrot.slane %v1839_v2, %v4643_v13  ;;  %v2295_v23 = vrot.slane %v1776_v20, %v4660_v39 }
 0x29f   :  { %v1555_v1 = vpop.xlane.xlu1 %1554  ;;  %v2602_v22 = vsel %vm2034_vm8, %v2601_v49, %v2597_v38 }
 0x2a0   :  { %v1769_v19 = vadd.f32 %v4507_v34, %v1555_v1  ;;  %v2255_v1 = vrot.slane %v1768_v14, %v4577_v29  ;;  %v1703_v14 = vpop.xlane.xlu0 %1702 }
 0x2a1   :  { %v1843_v58 = vadd.f32 %v4507_v34, %v1703_v14 }
 0x2a2   :  { %v2260_v24 = vrot.slane %v1769_v19, %v4571_v52  ;;  %v1774_v52 = vadd.f32 %v4507_v34, %v4522_v30  ;;  %v2256_v29 = vsel %vm1992_vm2, %v2255_v1, %v2251_v42  ;;  %v2607_v1 = vsel %vm2041_vm9, %v2606_v50, %v2602_v22 }
 0x2a3   :  { %v5004_v55 = vpop.xlane.xlu1 %1698  ;;  %vm2644_vm2 = vcmask 1044484  }
 0x2a4   :  { %v2261_v28 = vsel %vm1999_vm3, %v2260_v24, %v2256_v29  ;;  %v1705_v54 = vpop.xlane.xlu0 %1704  ;;  %vm2646_vm3 = vcmask 1045509  }
 0x2a5   :  { %v1844_v2 = vadd.f32 %v4507_v34, %v1705_v54 }
 0x2a7   :  { %v1697_v7 = vpop.xlane.xlu1 %1696 }
 0x2a8   :  { %v1840_v30 = vadd.f32 %v4507_v34, %v1697_v7  ;;  %v2266_v7 = vsel %vm2006_vm4, %v2265_v26, %v2261_v28  ;;  %vm2648_vm4 = vcmask 1046534  }
 0x2aa   :  { %v2611_v4 = vrot.slane %v1840_v30, %v4660_v39  ;;  %v2305_v39 = vrot.slane %v1778_v44, %v4701_v18  ;;  %v2631_v44 = vrot.slane %v1844_v2, %v4729_v51 }
 0x2ab   :  { %v1559_v45 = vpop.xlane.xlu1 %1558 }
 0x2ac   :  { %v1771_v9 = vadd.f32 %v4507_v34, %v1559_v45  ;;  %v1841_v45 = vadd.f32 %v4507_v34, %v5004_v55  ;;  %v2612_v8 = vsel %vm2048_vm10, %v2611_v4, %v2607_v1 }
 0x2ae   :  { %v2270_v46 = vrot.slane %v1771_v9, %v4588_v25  ;;  %v2285_v25 = vrot.slane %v1774_v52, %v4646_v36  ;;  %v1780_v36 = vadd.f32 %v4507_v34, %v4550_v33  ;;  %v2310_v9 = vrot.slane %v1779_v41, %v4696_v62 }
 0x2af   :  { %v1701_v16 = vpop.xlane.xlu1 %1700  ;;  %v2616_v12 = vrot.slane %v1841_v45, %v4649_v57  ;;  %v2320_v52 = vrot.slane %v1781_v47, %v4724_v53 }
 0x2b0   :  { %v2271_v27 = vsel %vm2013_vm5, %v2270_v46, %v2266_v7  ;;  %v1842_v48 = vadd.f32 %v4507_v34, %v1701_v16  ;;  %v2315_v61 = vrot.slane %v1780_v36, %v4729_v51  ;;  %vm2650_vm5 = vcmask 1047559  }
 0x2b1   :  { %v2276_v42 = vsel %vm2020_vm6, %v2275_v56, %v2271_v27  ;;  %v2617_v16 = vsel %vm2055_vm11, %v2616_v12, %v2612_v8 }
 0x2b2   :  { %v2621_v43 = vrot.slane %v1842_v48, %v4701_v18 }
 0x2b3   :  { %v1563_v19 = vpop.xlane.xlu1 %1562 }
 0x2b4   :  { %v1773_v6 = vadd.f32 %v4507_v34, %v1563_v19  ;;  %v2622_v28 = vsel %vm2062_vm12, %v2621_v43, %v2617_v16 }
 0x2b6   :  { %v2280_v13 = vrot.slane %v1773_v6, %v4606_v63  ;;  %v1813_v63 = vadd.f32 %v4507_v34, %v1643_v37  ;;  %v1827_v37 = vadd.f32 %v4507_v34, %v4946_v59  ;;  %v2626_v59 = vrot.slane %v1843_v58, %v4696_v62 }
 0x2b7   :  { %v1673_v24 = vpop.xlane.xlu1 %1672 }
 0x2b8   :  { %v2281_v55 = vsel %vm2027_vm7, %v2280_v13, %v2276_v42  ;;  %v1828_v17 = vadd.f32 %v4507_v34, %v1673_v24  ;;  %v2478_v26 = vrot.slane %v1813_v63, %v4724_v53  ;;  %v2547_v30 = vrot.slane %v1827_v37, %v4696_v62 }
 0x2b9   :  { %v2286_v33 = vsel %vm2034_vm8, %v2285_v25, %v2281_v55  ;;  %v2627_v21 = vsel %vm2069_vm13, %v2626_v59, %v2622_v28 }
 0x2ba   :  { %v2291_v0 = vsel %vm2041_vm9, %v2290_v5, %v2286_v33  ;;  %v2552_v32 = vrot.slane %v1828_v17, %v4729_v51  ;;  %v2548_v7 = vsel %vm2069_vm13, %v2547_v30, %v4967_v60  ;;  %v2479_v19 = vsel %vm2083_vm15, %v2478_v26, %v4876_v11 }
 0x2bb   :  { %v2296_v18 = vsel %vm2048_vm10, %v2295_v23, %v2291_v0  ;;  %v1675_v29 = vpop.xlane.xlu1 %1674  ;;  %v2632_v60 = vsel %vm2076_vm14, %v2631_v44, %v2627_v21 }
 0x2bc   :  { %v2301_v3 = vsel %vm2055_vm11, %v2300_v31, %v2296_v18  ;;  %v1829_v57 = vadd.f32 %v4507_v34, %v1675_v29  ;;  %v2553_v14 = vsel %vm2076_vm14, %v2552_v32, %v2548_v7 }
 0x2bd   :  { %v2306_v46 = vsel %vm2062_vm12, %v2305_v39, %v2301_v3 }
 0x2be   :  { %v2311_v10 = vsel %vm2069_vm13, %v2310_v9, %v2306_v46  ;;  %v2557_v40 = vrot.slane %v1829_v57, %v4724_v53 }
 0x2bf   :  { %v2316_v5 = vsel %vm2076_vm14, %v2315_v61, %v2311_v10  ;;  %v1707_v20 = vpop.xlane.xlu1 %1706 }
 0x2c0   :  { %v2321_v25 = vsel %vm2083_vm15, %v2320_v52, %v2316_v5  ;;  %v1845_v41 = vadd.f32 %v4507_v34, %v1707_v20  ;;  %v2558_v34 = vsel %vm2083_vm15, %v2557_v40, %v2553_v14 }
 0x2c1   :  { %v2643_v62 = vsel %vm2642_vm1, %v2321_v25, %v4999_v15 }
 0x2c2   :  { %v2645_v38 = vsel %vm2644_vm2, %v4744_v35, %v2643_v62  ;;  %v2636_v50 = vrot.slane %v1845_v41, %v4724_v53 }
 0x2c3   :  { %v2647_v51 = vsel %vm2646_vm3, %v2479_v19, %v2645_v38 }
 0x2c4   :  { %v2649_v27 = vsel %vm2648_vm4, %v2558_v34, %v2647_v51  ;;  %v2637_v15 = vsel %vm2083_vm15, %v2636_v50, %v2632_v60 }
 0x2c5   :  { %v2651_v6 = vsel %vm2650_vm5, %v2637_v15, %v2649_v27 }
 0x2c6   :  { %2653 = vst [vmem:[%s5136_s7] sm:$0xff] %v2651_v6 }

</bundles_post_ra>
